<compile_context>
chip_gen: v6e
topology: v6e:2x2x1
jax: 0.10.0
libtpu: 0.0.40
codegen_flags: <defaults>
</compile_context>

<pallas_src>
import jax
import jax.numpy as jnp
from jax.experimental import pallas as pl
from jax.experimental.pallas import tpu as pltpu


# ---------------------------------------------------------------------------
# Fused LeNet kernel (one grid step == one image)
# ---------------------------------------------------------------------------
def _lenet_kernel(x_ref, t1_ref, b1_ref, ph1_ref, pw1_ref,
                  t2_ref, b2_ref, ph2_ref, pw2_ref,
                  wf1_ref, bf1_ref, wf2_ref, bf2_ref, wf3_ref, bf3_ref,
                  out_ref, p1_scr, p2_scr):
    f32 = jnp.float32

    # ---- conv1 (1->6, k=5, pad=2) + tanh; output layout (28, 28*6) ---------
    # out[y, x*6+co] = sum_kh (x_pad[y+kh, :] @ T1[kh])[x*6+co]
    acc1 = jnp.dot(x_ref[0, 0:28, :], t1_ref[0], preferred_element_type=f32)
    for kh in range(1, 5):
        acc1 += jnp.dot(x_ref[0, kh:kh + 28, :], t1_ref[kh],
                        preferred_element_type=f32)
    h1 = jnp.tanh(acc1 + b1_ref[...])                         # (28, 168)

    # ---- AvgPool2d(2,2) as two pooling matmuls: (14, 14*6) -----------------
    p1_scr[...] = jnp.dot(
        jnp.dot(ph1_ref[...], h1, preferred_element_type=f32),
        pw1_ref[...], preferred_element_type=f32)             # (14, 84)

    # ---- conv2 (6->16, k=5, pad=0) + tanh; output layout (10, 10*16) -------
    acc2 = jnp.dot(p1_scr[0:10, :], t2_ref[0], preferred_element_type=f32)
    for kh in range(1, 5):
        acc2 += jnp.dot(p1_scr[kh:kh + 10, :], t2_ref[kh],
                        preferred_element_type=f32)
    h2 = jnp.tanh(acc2 + b2_ref[...])                         # (10, 160)

    # ---- AvgPool2d(2,2): (5, 5*16) ------------------------------------------
    p2_scr[...] = jnp.dot(
        jnp.dot(ph2_ref[...], h2, preferred_element_type=f32),
        pw2_ref[...], preferred_element_type=f32)             # (5, 80)

    # ---- classifier: fc1 (400->120, as 5 row matmuls), fc2, fc3 ------------
    f = jnp.dot(p2_scr[0:1, :], wf1_ref[0], preferred_element_type=f32)
    for y in range(1, 5):
        f += jnp.dot(p2_scr[y:y + 1, :], wf1_ref[y],
                     preferred_element_type=f32)
    f1 = jnp.tanh(f + bf1_ref[...])                           # (1, 128)
    f2 = jnp.tanh(jnp.dot(f1, wf2_ref[...], preferred_element_type=f32)
                  + bf2_ref[...])                             # (1, 128)
    logits = (jnp.dot(f2, wf3_ref[...], preferred_element_type=f32)
              + bf3_ref[...])                                 # (1, 128) lane-dense
    out_ref[0] = logits.astype(out_ref.dtype)


# ---------------------------------------------------------------------------
# One-time weight repacking (plain JAX, outside the kernel)
# ---------------------------------------------------------------------------
def prepare_params(p):
    f32 = jnp.float32

    # conv1 -> band matrices T1[kh]: (32, 28*6).
    # T1[kh, x+kw, x*6+co] = w1[co, 0, kh, kw]
    w1 = p["w1"].astype(f32)                          # (6, 1, 5, 5)
    wt1 = jnp.transpose(w1[:, 0], (1, 2, 0))          # (kh, kw, co)
    sh1 = (5, 28, 5, 6)
    kh = jnp.arange(5).reshape(5, 1, 1, 1)
    xx = jnp.arange(28).reshape(1, 28, 1, 1)
    kw = jnp.arange(5).reshape(1, 1, 5, 1)
    co = jnp.arange(6).reshape(1, 1, 1, 6)
    t1 = jnp.zeros((5, 32, 28 * 6), f32).at[
        jnp.broadcast_to(kh, sh1),
        jnp.broadcast_to(xx + kw, sh1),
        jnp.broadcast_to(xx * 6 + co, sh1),
    ].set(jnp.broadcast_to(wt1[:, None, :, :], sh1))
    b1r = jnp.tile(p["b1"].astype(f32), 28).reshape(1, 28 * 6)

    # conv2 -> band matrices T2[kh]: (14*6, 10*16).
    # T2[kh, (x+kw)*6+ci, x*16+co] = w2[co, ci, kh, kw]
    w2 = p["w2"].astype(f32)                          # (16, 6, 5, 5)
    wt2 = jnp.transpose(w2, (2, 3, 1, 0))             # (kh, kw, ci, co)
    sh2 = (5, 10, 5, 6, 16)
    kh = jnp.arange(5).reshape(5, 1, 1, 1, 1)
    xx = jnp.arange(10).reshape(1, 10, 1, 1, 1)
    kw = jnp.arange(5).reshape(1, 1, 5, 1, 1)
    ci = jnp.arange(6).reshape(1, 1, 1, 6, 1)
    co = jnp.arange(16).reshape(1, 1, 1, 1, 16)
    t2 = jnp.zeros((5, 14 * 6, 10 * 16), f32).at[
        jnp.broadcast_to(kh, sh2),
        jnp.broadcast_to((xx + kw) * 6 + ci, sh2),
        jnp.broadcast_to(xx * 16 + co, sh2),
    ].set(jnp.broadcast_to(wt2[:, None], sh2))
    b2r = jnp.tile(p["b2"].astype(f32), 10).reshape(1, 10 * 16)

    # AvgPool2d(2,2) as left (H) / right (W-within-lanes) matmuls: 0.5*0.5=0.25
    def pool_h(ho):
        i = jnp.arange(ho)
        return (jnp.zeros((ho, 2 * ho), f32)
                .at[i, 2 * i].set(0.5).at[i, 2 * i + 1].set(0.5))

    def pool_w(wo, c):
        xi = jnp.arange(2 * wo).reshape(-1, 1)
        cc = jnp.arange(c).reshape(1, -1)
        return (jnp.zeros((2 * wo * c, wo * c), f32)
                .at[xi * c + cc, (xi // 2) * c + cc].set(0.5))

    # fc1: permute rows from torch NCHW-flatten order (c*25+y*5+x) to our
    # (y, x, c) lane layout (y*80+x*16+c); zero-pad all FC dims to 128 lanes.
    yy = jnp.arange(5).reshape(5, 1, 1)
    xw = jnp.arange(5).reshape(1, 5, 1)
    cc = jnp.arange(16).reshape(1, 1, 16)
    perm = (cc * 25 + yy * 5 + xw).reshape(-1)                 # (400,)
    wf1 = jnp.pad(p["wf1"].astype(f32)[perm], ((0, 0), (0, 8)))   # (400, 128)
    wf1 = wf1.reshape(5, 80, 128)
    bf1 = jnp.pad(p["bf1"].astype(f32), (0, 8)).reshape(1, 128)
    wf2 = jnp.pad(p["wf2"].astype(f32), ((0, 8), (0, 44)))        # (128, 128)
    bf2 = jnp.pad(p["bf2"].astype(f32), (0, 44)).reshape(1, 128)
    wf3 = jnp.pad(p["wf3"].astype(f32), ((0, 44), (0, 118)))      # (128, 128)
    bf3 = jnp.pad(p["bf3"].astype(f32), (0, 118)).reshape(1, 128)

    return dict(t1=t1, b1r=b1r, ph1=pool_h(14), pw1=pool_w(14, 6),
                t2=t2, b2r=b2r, ph2=pool_h(5), pw2=pool_w(5, 16),
                wf1=wf1, bf1=bf1, wf2=wf2, bf2=bf2, wf3=wf3, bf3=bf3)


# ---------------------------------------------------------------------------
# Forward pass: single pallas_call, grid over batch
# ---------------------------------------------------------------------------
def lenet_forward(x, prep):
    n = x.shape[0]
    # conv1's padding=2 is realized once here: (N,1,28,28) -> (N,32,32).
    x_pad = jnp.pad(x[:, 0], ((0, 0), (2, 2), (2, 2)))

    weights = (prep["t1"], prep["b1r"], prep["ph1"], prep["pw1"],
               prep["t2"], prep["b2r"], prep["ph2"], prep["pw2"],
               prep["wf1"], prep["bf1"], prep["wf2"], prep["bf2"],
               prep["wf3"], prep["bf3"])

    def resident(a):   # full-array block, same block every step => stays in VMEM
        return pl.BlockSpec(a.shape, lambda i, _n=a.ndim: (0,) * _n)

    out = pl.pallas_call(
        _lenet_kernel,
        out_shape=jax.ShapeDtypeStruct((n, 1, 128), jnp.float32),
        grid=(n,),
        in_specs=[pl.BlockSpec((1, 32, 32), lambda i: (i, 0, 0))]
                 + [resident(w) for w in weights],
        out_specs=pl.BlockSpec((1, 1, 128), lambda i: (i, 0, 0)),
        scratch_shapes=[pltpu.VMEM((14, 84), jnp.float32),
                        pltpu.VMEM((5, 80), jnp.float32)],
        compiler_params=pltpu.CompilerParams(
            dimension_semantics=("parallel",)),
    )(x_pad, *weights)
    return out[:, 0, :10]


# ---------------------------------------------------------------------------
# Pure-JAX reference (for in-script correctness check)
# ---------------------------------------------------------------------------
def lenet_reference(x, params):
    hp = jax.lax.Precision.HIGHEST

    def conv(x_nchw, w, b, pad):
        n, cin, h, wd = x_nchw.shape
        cout, _, k, _ = w.shape
        xp = jnp.pad(x_nchw, ((0, 0), (0, 0), (pad, pad), (pad, pad)))
        ho, wo = h + 2 * pad - k + 1, wd + 2 * pad - k + 1
        cols = jnp.stack([xp[:, :, i:i + ho, j:j + wo]
                          for i in range(k) for j in range(k)], axis=2)
        cols = cols.reshape(n, cin * k * k, ho, wo).transpose(0, 2, 3, 1)
        wm = w.reshape(cout, cin * k * k).T
        out = jnp.dot(cols.reshape(-1, cin * k * k), wm, precision=hp) + b
        return out.reshape(n, ho, wo, cout).transpose(0, 3, 1, 2)

    def pool(y):
        return 0.25 * (y[:, :, 0::2, 0::2] + y[:, :, 0::2, 1::2]
                       + y[:, :, 1::2, 0::2] + y[:, :, 1::2, 1::2])

    y = pool(jnp.tanh(conv(x, params["w1"], params["b1"], pad=2)))
    y = pool(jnp.tanh(conv(y, params["w2"], params["b2"], pad=0)))
    flat = y.reshape(x.shape[0], -1)                 # torch NCHW flatten order
    h1 = jnp.tanh(jnp.dot(flat, params["wf1"], precision=hp) + params["bf1"])
    h2 = jnp.tanh(jnp.dot(h1, params["wf2"], precision=hp) + params["bf2"])
    return jnp.dot(h2, params["wf3"], precision=hp) + params["bf3"]


# ---------------------------------------------------------------------------
# Deterministic parameter init (PyTorch-style uniform(-1/sqrt(fan_in), ...))
# ---------------------------------------------------------------------------
def init_params(key):
    def uniform(k, shape, fan_in):
        bound = 1.0 / jnp.sqrt(jnp.float32(fan_in))
        return jax.random.uniform(k, shape, jnp.float32, -bound, bound)

    ks = jax.random.split(key, 10)
    return {
        # conv weights in torch layout (out, in, kh, kw); fc weights stored in
        # matmul form (in_features, out_features) with torch-flatten row order.
        "w1": uniform(ks[0], (6, 1, 5, 5), 25),
        "b1": uniform(ks[1], (6,), 25),
        "w2": uniform(ks[2], (16, 6, 5, 5), 150),
        "b2": uniform(ks[3], (16,), 150),
        "wf1": uniform(ks[4], (400, 120), 400),
        "bf1": uniform(ks[5], (120,), 400),
        "wf2": uniform(ks[6], (120, 84), 120),
        "bf2": uniform(ks[7], (84,), 120),
        "wf3": uniform(ks[8], (84, 10), 84),
        "bf3": uniform(ks[9], (10,), 84),
    }


if __name__ == "__main__":
    key = jax.random.PRNGKey(0)
    k_param, k_x = jax.random.split(key)

    params = init_params(k_param)
    prep = prepare_params(params)          # one-time weight repacking

    # LeNet architecture implies 28x28 single-channel input (flatten == 400).
    x = jax.random.normal(k_x, (2, 1, 28, 28), dtype=jnp.float32)

    fwd = jax.jit(lenet_forward)
    out = jax.block_until_ready(fwd(x, prep))

    assert out.shape == (2, 10), out.shape
    assert bool(jnp.all(jnp.isfinite(out)))

    ref = lenet_reference(x, params)
    assert bool(jnp.allclose(out, ref, rtol=2e-2, atol=2e-2)), (
        float(jnp.max(jnp.abs(out - ref))))

    print("KERNEL_OK")
</pallas_src>

<mosaic_0001>
module attributes {stable_mosaic.version = 11 : i64} {
  func.func @_lenet_kernel(%arg0: i32, %arg1: memref<1x32x32xf32, #tpu.memory_space<vmem>>, %arg2: memref<5x32x168xf32, #tpu.memory_space<vmem>>, %arg3: memref<1x168xf32, #tpu.memory_space<vmem>>, %arg4: memref<14x28xf32, #tpu.memory_space<vmem>>, %arg5: memref<168x84xf32, #tpu.memory_space<vmem>>, %arg6: memref<5x84x160xf32, #tpu.memory_space<vmem>>, %arg7: memref<1x160xf32, #tpu.memory_space<vmem>>, %arg8: memref<5x10xf32, #tpu.memory_space<vmem>>, %arg9: memref<160x80xf32, #tpu.memory_space<vmem>>, %arg10: memref<5x80x128xf32, #tpu.memory_space<vmem>>, %arg11: memref<1x128xf32, #tpu.memory_space<vmem>>, %arg12: memref<128x128xf32, #tpu.memory_space<vmem>>, %arg13: memref<1x128xf32, #tpu.memory_space<vmem>>, %arg14: memref<128x128xf32, #tpu.memory_space<vmem>>, %arg15: memref<1x128xf32, #tpu.memory_space<vmem>>, %arg16: memref<1x1x128xf32, #tpu.memory_space<vmem>>, %arg17: memref<14x84xf32, #tpu.memory_space<vmem>>, %arg18: memref<5x80xf32, #tpu.memory_space<vmem>>) attributes {dimension_semantics = [#tpu.dimension_semantics<parallel>], iteration_bounds = array<i64: 2>, scalar_prefetch = 0 : i64, scratch_operands = 2 : i64, tpu.core_type = #tpu.core_type<tc>, window_params = [{transform_indices = @transform_0, window_bounds = array<i64: 1, 32, 32>}, {pipeline_mode = #tpu.pipeline_mode<synchronous>, transform_indices = @transform_1, window_bounds = array<i64: 5, 32, 168>}, {pipeline_mode = #tpu.pipeline_mode<synchronous>, transform_indices = @transform_2, window_bounds = array<i64: 1, 168>}, {pipeline_mode = #tpu.pipeline_mode<synchronous>, transform_indices = @transform_3, window_bounds = array<i64: 14, 28>}, {pipeline_mode = #tpu.pipeline_mode<synchronous>, transform_indices = @transform_4, window_bounds = array<i64: 168, 84>}, {pipeline_mode = #tpu.pipeline_mode<synchronous>, transform_indices = @transform_5, window_bounds = array<i64: 5, 84, 160>}, {pipeline_mode = #tpu.pipeline_mode<synchronous>, transform_indices = @transform_6, window_bounds = array<i64: 1, 160>}, {pipeline_mode = #tpu.pipeline_mode<synchronous>, transform_indices = @transform_7, window_bounds = array<i64: 5, 10>}, {pipeline_mode = #tpu.pipeline_mode<synchronous>, transform_indices = @transform_8, window_bounds = array<i64: 160, 80>}, {pipeline_mode = #tpu.pipeline_mode<synchronous>, transform_indices = @transform_9, window_bounds = array<i64: 5, 80, 128>}, {pipeline_mode = #tpu.pipeline_mode<synchronous>, transform_indices = @transform_10, window_bounds = array<i64: 1, 128>}, {pipeline_mode = #tpu.pipeline_mode<synchronous>, transform_indices = @transform_11, window_bounds = array<i64: 128, 128>}, {pipeline_mode = #tpu.pipeline_mode<synchronous>, transform_indices = @transform_12, window_bounds = array<i64: 1, 128>}, {pipeline_mode = #tpu.pipeline_mode<synchronous>, transform_indices = @transform_13, window_bounds = array<i64: 128, 128>}, {pipeline_mode = #tpu.pipeline_mode<synchronous>, transform_indices = @transform_14, window_bounds = array<i64: 1, 128>}, {transform_indices = @transform_15, window_bounds = array<i64: 1, 1, 128>}]} {
    %c0 = arith.constant 0 : index
    %c0_0 = arith.constant 0 : index
    %c0_1 = arith.constant 0 : index
    %0 = vector.load %arg1[%c0, %c0_0, %c0_1] : memref<1x32x32xf32, #tpu.memory_space<vmem>>, vector<1x28x32xf32>
    %1 = vector.shape_cast %0 : vector<1x28x32xf32> to vector<28x32xf32>
    %c0_2 = arith.constant 0 : index
    %c0_3 = arith.constant 0 : index
    %c0_4 = arith.constant 0 : index
    %2 = vector.load %arg2[%c0_2, %c0_3, %c0_4] : memref<5x32x168xf32, #tpu.memory_space<vmem>>, vector<1x32x168xf32>
    %3 = vector.shape_cast %2 : vector<1x32x168xf32> to vector<32x168xf32>
    %cst = arith.constant dense<0.000000e+00> : vector<28x168xf32>
    %4 = tpu.matmul %1, %3, %cst {dimension_numbers = #tpu.dot_dimension_numbers<[1], [0], [0], [1], [0, 0, 1, 1], [], []>} : vector<28x32xf32>, vector<32x168xf32>, vector<28x168xf32> -> vector<28x168xf32>
    %c0_5 = arith.constant 0 : index
    %c1 = arith.constant 1 : index
    %c0_6 = arith.constant 0 : index
    %5 = vector.load %arg1[%c0_5, %c1, %c0_6] : memref<1x32x32xf32, #tpu.memory_space<vmem>>, vector<1x28x32xf32>
    %6 = vector.shape_cast %5 : vector<1x28x32xf32> to vector<28x32xf32>
    %c1_7 = arith.constant 1 : index
    %c0_8 = arith.constant 0 : index
    %c0_9 = arith.constant 0 : index
    %7 = vector.load %arg2[%c1_7, %c0_8, %c0_9] : memref<5x32x168xf32, #tpu.memory_space<vmem>>, vector<1x32x168xf32>
    %8 = vector.shape_cast %7 : vector<1x32x168xf32> to vector<32x168xf32>
    %cst_10 = arith.constant dense<0.000000e+00> : vector<28x168xf32>
    %9 = tpu.matmul %6, %8, %cst_10 {dimension_numbers = #tpu.dot_dimension_numbers<[1], [0], [0], [1], [0, 0, 1, 1], [], []>} : vector<28x32xf32>, vector<32x168xf32>, vector<28x168xf32> -> vector<28x168xf32>
    %10 = arith.addf %4, %9 : vector<28x168xf32>
    %c0_11 = arith.constant 0 : index
    %c2 = arith.constant 2 : index
    %c0_12 = arith.constant 0 : index
    %11 = vector.load %arg1[%c0_11, %c2, %c0_12] : memref<1x32x32xf32, #tpu.memory_space<vmem>>, vector<1x28x32xf32>
    %12 = vector.shape_cast %11 : vector<1x28x32xf32> to vector<28x32xf32>
    %c2_13 = arith.constant 2 : index
    %c0_14 = arith.constant 0 : index
    %c0_15 = arith.constant 0 : index
    %13 = vector.load %arg2[%c2_13, %c0_14, %c0_15] : memref<5x32x168xf32, #tpu.memory_space<vmem>>, vector<1x32x168xf32>
    %14 = vector.shape_cast %13 : vector<1x32x168xf32> to vector<32x168xf32>
    %cst_16 = arith.constant dense<0.000000e+00> : vector<28x168xf32>
    %15 = tpu.matmul %12, %14, %cst_16 {dimension_numbers = #tpu.dot_dimension_numbers<[1], [0], [0], [1], [0, 0, 1, 1], [], []>} : vector<28x32xf32>, vector<32x168xf32>, vector<28x168xf32> -> vector<28x168xf32>
    %16 = arith.addf %10, %15 : vector<28x168xf32>
    %c0_17 = arith.constant 0 : index
    %c3 = arith.constant 3 : index
    %c0_18 = arith.constant 0 : index
    %17 = vector.load %arg1[%c0_17, %c3, %c0_18] : memref<1x32x32xf32, #tpu.memory_space<vmem>>, vector<1x28x32xf32>
    %18 = vector.shape_cast %17 : vector<1x28x32xf32> to vector<28x32xf32>
    %c3_19 = arith.constant 3 : index
    %c0_20 = arith.constant 0 : index
    %c0_21 = arith.constant 0 : index
    %19 = vector.load %arg2[%c3_19, %c0_20, %c0_21] : memref<5x32x168xf32, #tpu.memory_space<vmem>>, vector<1x32x168xf32>
    %20 = vector.shape_cast %19 : vector<1x32x168xf32> to vector<32x168xf32>
    %cst_22 = arith.constant dense<0.000000e+00> : vector<28x168xf32>
    %21 = tpu.matmul %18, %20, %cst_22 {dimension_numbers = #tpu.dot_dimension_numbers<[1], [0], [0], [1], [0, 0, 1, 1], [], []>} : vector<28x32xf32>, vector<32x168xf32>, vector<28x168xf32> -> vector<28x168xf32>
    %22 = arith.addf %16, %21 : vector<28x168xf32>
    %c0_23 = arith.constant 0 : index
    %c4 = arith.constant 4 : index
    %c0_24 = arith.constant 0 : index
    %23 = vector.load %arg1[%c0_23, %c4, %c0_24] : memref<1x32x32xf32, #tpu.memory_space<vmem>>, vector<1x28x32xf32>
    %24 = vector.shape_cast %23 : vector<1x28x32xf32> to vector<28x32xf32>
    %c4_25 = arith.constant 4 : index
    %c0_26 = arith.constant 0 : index
    %c0_27 = arith.constant 0 : index
    %25 = vector.load %arg2[%c4_25, %c0_26, %c0_27] : memref<5x32x168xf32, #tpu.memory_space<vmem>>, vector<1x32x168xf32>
    %26 = vector.shape_cast %25 : vector<1x32x168xf32> to vector<32x168xf32>
    %cst_28 = arith.constant dense<0.000000e+00> : vector<28x168xf32>
    %27 = tpu.matmul %24, %26, %cst_28 {dimension_numbers = #tpu.dot_dimension_numbers<[1], [0], [0], [1], [0, 0, 1, 1], [], []>} : vector<28x32xf32>, vector<32x168xf32>, vector<28x168xf32> -> vector<28x168xf32>
    %28 = arith.addf %22, %27 : vector<28x168xf32>
    %c0_29 = arith.constant 0 : index
    %c0_30 = arith.constant 0 : index
    %29 = vector.load %arg3[%c0_29, %c0_30] : memref<1x168xf32, #tpu.memory_space<vmem>>, vector<1x168xf32>
    %30 = vector.broadcast %29 : vector<1x168xf32> to vector<28x168xf32>
    %31 = arith.addf %28, %30 : vector<28x168xf32>
    %32 = math.tanh %31 : vector<28x168xf32>
    %c0_31 = arith.constant 0 : index
    %c0_32 = arith.constant 0 : index
    %33 = vector.load %arg4[%c0_31, %c0_32] : memref<14x28xf32, #tpu.memory_space<vmem>>, vector<14x28xf32>
    %cst_33 = arith.constant dense<0.000000e+00> : vector<14x168xf32>
    %34 = tpu.matmul %33, %32, %cst_33 {dimension_numbers = #tpu.dot_dimension_numbers<[1], [0], [0], [1], [0, 0, 1, 1], [], []>} : vector<14x28xf32>, vector<28x168xf32>, vector<14x168xf32> -> vector<14x168xf32>
    %c0_34 = arith.constant 0 : index
    %c0_35 = arith.constant 0 : index
    %35 = vector.load %arg5[%c0_34, %c0_35] : memref<168x84xf32, #tpu.memory_space<vmem>>, vector<168x84xf32>
    %cst_36 = arith.constant dense<0.000000e+00> : vector<14x84xf32>
    %36 = tpu.matmul %34, %35, %cst_36 {dimension_numbers = #tpu.dot_dimension_numbers<[1], [0], [0], [1], [0, 0, 1, 1], [], []>} : vector<14x168xf32>, vector<168x84xf32>, vector<14x84xf32> -> vector<14x84xf32>
    %c0_37 = arith.constant 0 : index
    %c0_38 = arith.constant 0 : index
    %37 = vector.load %arg17[%c0_37, %c0_38] : memref<14x84xf32, #tpu.memory_space<vmem>>, vector<14x84xf32>
    tpu.vector_store %arg17[%c0_37, %c0_38], %36 {strides = array<i32>} : memref<14x84xf32, #tpu.memory_space<vmem>>, vector<14x84xf32>,
    %c0_39 = arith.constant 0 : index
    %c0_40 = arith.constant 0 : index
    %38 = vector.load %arg17[%c0_39, %c0_40] : memref<14x84xf32, #tpu.memory_space<vmem>>, vector<10x84xf32>
    %c0_41 = arith.constant 0 : index
    %c0_42 = arith.constant 0 : index
    %c0_43 = arith.constant 0 : index
    %39 = vector.load %arg6[%c0_41, %c0_42, %c0_43] : memref<5x84x160xf32, #tpu.memory_space<vmem>>, vector<1x84x160xf32>
    %40 = vector.shape_cast %39 : vector<1x84x160xf32> to vector<84x160xf32>
    %cst_44 = arith.constant dense<0.000000e+00> : vector<10x160xf32>
    %41 = tpu.matmul %38, %40, %cst_44 {dimension_numbers = #tpu.dot_dimension_numbers<[1], [0], [0], [1], [0, 0, 1, 1], [], []>} : vector<10x84xf32>, vector<84x160xf32>, vector<10x160xf32> -> vector<10x160xf32>
    %c1_45 = arith.constant 1 : index
    %c0_46 = arith.constant 0 : index
    %42 = vector.load %arg17[%c1_45, %c0_46] : memref<14x84xf32, #tpu.memory_space<vmem>>, vector<10x84xf32>
    %c1_47 = arith.constant 1 : index
    %c0_48 = arith.constant 0 : index
    %c0_49 = arith.constant 0 : index
    %43 = vector.load %arg6[%c1_47, %c0_48, %c0_49] : memref<5x84x160xf32, #tpu.memory_space<vmem>>, vector<1x84x160xf32>
    %44 = vector.shape_cast %43 : vector<1x84x160xf32> to vector<84x160xf32>
    %cst_50 = arith.constant dense<0.000000e+00> : vector<10x160xf32>
    %45 = tpu.matmul %42, %44, %cst_50 {dimension_numbers = #tpu.dot_dimension_numbers<[1], [0], [0], [1], [0, 0, 1, 1], [], []>} : vector<10x84xf32>, vector<84x160xf32>, vector<10x160xf32> -> vector<10x160xf32>
    %46 = arith.addf %41, %45 : vector<10x160xf32>
    %c2_51 = arith.constant 2 : index
    %c0_52 = arith.constant 0 : index
    %47 = vector.load %arg17[%c2_51, %c0_52] : memref<14x84xf32, #tpu.memory_space<vmem>>, vector<10x84xf32>
    %c2_53 = arith.constant 2 : index
    %c0_54 = arith.constant 0 : index
    %c0_55 = arith.constant 0 : index
    %48 = vector.load %arg6[%c2_53, %c0_54, %c0_55] : memref<5x84x160xf32, #tpu.memory_space<vmem>>, vector<1x84x160xf32>
    %49 = vector.shape_cast %48 : vector<1x84x160xf32> to vector<84x160xf32>
    %cst_56 = arith.constant dense<0.000000e+00> : vector<10x160xf32>
    %50 = tpu.matmul %47, %49, %cst_56 {dimension_numbers = #tpu.dot_dimension_numbers<[1], [0], [0], [1], [0, 0, 1, 1], [], []>} : vector<10x84xf32>, vector<84x160xf32>, vector<10x160xf32> -> vector<10x160xf32>
    %51 = arith.addf %46, %50 : vector<10x160xf32>
    %c3_57 = arith.constant 3 : index
    %c0_58 = arith.constant 0 : index
    %52 = vector.load %arg17[%c3_57, %c0_58] : memref<14x84xf32, #tpu.memory_space<vmem>>, vector<10x84xf32>
    %c3_59 = arith.constant 3 : index
    %c0_60 = arith.constant 0 : index
    %c0_61 = arith.constant 0 : index
    %53 = vector.load %arg6[%c3_59, %c0_60, %c0_61] : memref<5x84x160xf32, #tpu.memory_space<vmem>>, vector<1x84x160xf32>
    %54 = vector.shape_cast %53 : vector<1x84x160xf32> to vector<84x160xf32>
    %cst_62 = arith.constant dense<0.000000e+00> : vector<10x160xf32>
    %55 = tpu.matmul %52, %54, %cst_62 {dimension_numbers = #tpu.dot_dimension_numbers<[1], [0], [0], [1], [0, 0, 1, 1], [], []>} : vector<10x84xf32>, vector<84x160xf32>, vector<10x160xf32> -> vector<10x160xf32>
    %56 = arith.addf %51, %55 : vector<10x160xf32>
    %c4_63 = arith.constant 4 : index
    %c0_64 = arith.constant 0 : index
    %57 = vector.load %arg17[%c4_63, %c0_64] : memref<14x84xf32, #tpu.memory_space<vmem>>, vector<10x84xf32>
    %c4_65 = arith.constant 4 : index
    %c0_66 = arith.constant 0 : index
    %c0_67 = arith.constant 0 : index
    %58 = vector.load %arg6[%c4_65, %c0_66, %c0_67] : memref<5x84x160xf32, #tpu.memory_space<vmem>>, vector<1x84x160xf32>
    %59 = vector.shape_cast %58 : vector<1x84x160xf32> to vector<84x160xf32>
    %cst_68 = arith.constant dense<0.000000e+00> : vector<10x160xf32>
    %60 = tpu.matmul %57, %59, %cst_68 {dimension_numbers = #tpu.dot_dimension_numbers<[1], [0], [0], [1], [0, 0, 1, 1], [], []>} : vector<10x84xf32>, vector<84x160xf32>, vector<10x160xf32> -> vector<10x160xf32>
    %61 = arith.addf %56, %60 : vector<10x160xf32>
    %c0_69 = arith.constant 0 : index
    %c0_70 = arith.constant 0 : index
    %62 = vector.load %arg7[%c0_69, %c0_70] : memref<1x160xf32, #tpu.memory_space<vmem>>, vector<1x160xf32>
    %63 = vector.broadcast %62 : vector<1x160xf32> to vector<10x160xf32>
    %64 = arith.addf %61, %63 : vector<10x160xf32>
    %65 = math.tanh %64 : vector<10x160xf32>
    %c0_71 = arith.constant 0 : index
    %c0_72 = arith.constant 0 : index
    %66 = vector.load %arg8[%c0_71, %c0_72] : memref<5x10xf32, #tpu.memory_space<vmem>>, vector<5x10xf32>
    %cst_73 = arith.constant dense<0.000000e+00> : vector<5x160xf32>
    %67 = tpu.matmul %66, %65, %cst_73 {dimension_numbers = #tpu.dot_dimension_numbers<[1], [0], [0], [1], [0, 0, 1, 1], [], []>} : vector<5x10xf32>, vector<10x160xf32>, vector<5x160xf32> -> vector<5x160xf32>
    %c0_74 = arith.constant 0 : index
    %c0_75 = arith.constant 0 : index
    %68 = vector.load %arg9[%c0_74, %c0_75] : memref<160x80xf32, #tpu.memory_space<vmem>>, vector<160x80xf32>
    %cst_76 = arith.constant dense<0.000000e+00> : vector<5x80xf32>
    %69 = tpu.matmul %67, %68, %cst_76 {dimension_numbers = #tpu.dot_dimension_numbers<[1], [0], [0], [1], [0, 0, 1, 1], [], []>} : vector<5x160xf32>, vector<160x80xf32>, vector<5x80xf32> -> vector<5x80xf32>
    %c0_77 = arith.constant 0 : index
    %c0_78 = arith.constant 0 : index
    %70 = vector.load %arg18[%c0_77, %c0_78] : memref<5x80xf32, #tpu.memory_space<vmem>>, vector<5x80xf32>
    tpu.vector_store %arg18[%c0_77, %c0_78], %69 {strides = array<i32>} : memref<5x80xf32, #tpu.memory_space<vmem>>, vector<5x80xf32>,
    %c0_79 = arith.constant 0 : index
    %c0_80 = arith.constant 0 : index
    %71 = vector.load %arg18[%c0_79, %c0_80] : memref<5x80xf32, #tpu.memory_space<vmem>>, vector<1x80xf32>
    %c0_81 = arith.constant 0 : index
    %c0_82 = arith.constant 0 : index
    %c0_83 = arith.constant 0 : index
    %72 = vector.load %arg10[%c0_81, %c0_82, %c0_83] : memref<5x80x128xf32, #tpu.memory_space<vmem>>, vector<1x80x128xf32>
    %73 = vector.shape_cast %72 : vector<1x80x128xf32> to vector<80x128xf32>
    %cst_84 = arith.constant dense<0.000000e+00> : vector<1x128xf32>
    %74 = tpu.matmul %71, %73, %cst_84 {dimension_numbers = #tpu.dot_dimension_numbers<[1], [0], [0], [1], [0, 0, 1, 1], [], []>} : vector<1x80xf32>, vector<80x128xf32>, vector<1x128xf32> -> vector<1x128xf32>
    %c1_85 = arith.constant 1 : index
    %c0_86 = arith.constant 0 : index
    %75 = vector.load %arg18[%c1_85, %c0_86] : memref<5x80xf32, #tpu.memory_space<vmem>>, vector<1x80xf32>
    %c1_87 = arith.constant 1 : index
    %c0_88 = arith.constant 0 : index
    %c0_89 = arith.constant 0 : index
    %76 = vector.load %arg10[%c1_87, %c0_88, %c0_89] : memref<5x80x128xf32, #tpu.memory_space<vmem>>, vector<1x80x128xf32>
    %77 = vector.shape_cast %76 : vector<1x80x128xf32> to vector<80x128xf32>
    %cst_90 = arith.constant dense<0.000000e+00> : vector<1x128xf32>
    %78 = tpu.matmul %75, %77, %cst_90 {dimension_numbers = #tpu.dot_dimension_numbers<[1], [0], [0], [1], [0, 0, 1, 1], [], []>} : vector<1x80xf32>, vector<80x128xf32>, vector<1x128xf32> -> vector<1x128xf32>
    %79 = arith.addf %74, %78 : vector<1x128xf32>
    %c2_91 = arith.constant 2 : index
    %c0_92 = arith.constant 0 : index
    %80 = vector.load %arg18[%c2_91, %c0_92] : memref<5x80xf32, #tpu.memory_space<vmem>>, vector<1x80xf32>
    %c2_93 = arith.constant 2 : index
    %c0_94 = arith.constant 0 : index
    %c0_95 = arith.constant 0 : index
    %81 = vector.load %arg10[%c2_93, %c0_94, %c0_95] : memref<5x80x128xf32, #tpu.memory_space<vmem>>, vector<1x80x128xf32>
    %82 = vector.shape_cast %81 : vector<1x80x128xf32> to vector<80x128xf32>
    %cst_96 = arith.constant dense<0.000000e+00> : vector<1x128xf32>
    %83 = tpu.matmul %80, %82, %cst_96 {dimension_numbers = #tpu.dot_dimension_numbers<[1], [0], [0], [1], [0, 0, 1, 1], [], []>} : vector<1x80xf32>, vector<80x128xf32>, vector<1x128xf32> -> vector<1x128xf32>
    %84 = arith.addf %79, %83 : vector<1x128xf32>
    %c3_97 = arith.constant 3 : index
    %c0_98 = arith.constant 0 : index
    %85 = vector.load %arg18[%c3_97, %c0_98] : memref<5x80xf32, #tpu.memory_space<vmem>>, vector<1x80xf32>
    %c3_99 = arith.constant 3 : index
    %c0_100 = arith.constant 0 : index
    %c0_101 = arith.constant 0 : index
    %86 = vector.load %arg10[%c3_99, %c0_100, %c0_101] : memref<5x80x128xf32, #tpu.memory_space<vmem>>, vector<1x80x128xf32>
    %87 = vector.shape_cast %86 : vector<1x80x128xf32> to vector<80x128xf32>
    %cst_102 = arith.constant dense<0.000000e+00> : vector<1x128xf32>
    %88 = tpu.matmul %85, %87, %cst_102 {dimension_numbers = #tpu.dot_dimension_numbers<[1], [0], [0], [1], [0, 0, 1, 1], [], []>} : vector<1x80xf32>, vector<80x128xf32>, vector<1x128xf32> -> vector<1x128xf32>
    %89 = arith.addf %84, %88 : vector<1x128xf32>
    %c4_103 = arith.constant 4 : index
    %c0_104 = arith.constant 0 : index
    %90 = vector.load %arg18[%c4_103, %c0_104] : memref<5x80xf32, #tpu.memory_space<vmem>>, vector<1x80xf32>
    %c4_105 = arith.constant 4 : index
    %c0_106 = arith.constant 0 : index
    %c0_107 = arith.constant 0 : index
    %91 = vector.load %arg10[%c4_105, %c0_106, %c0_107] : memref<5x80x128xf32, #tpu.memory_space<vmem>>, vector<1x80x128xf32>
    %92 = vector.shape_cast %91 : vector<1x80x128xf32> to vector<80x128xf32>
    %cst_108 = arith.constant dense<0.000000e+00> : vector<1x128xf32>
    %93 = tpu.matmul %90, %92, %cst_108 {dimension_numbers = #tpu.dot_dimension_numbers<[1], [0], [0], [1], [0, 0, 1, 1], [], []>} : vector<1x80xf32>, vector<80x128xf32>, vector<1x128xf32> -> vector<1x128xf32>
    %94 = arith.addf %89, %93 : vector<1x128xf32>
    %c0_109 = arith.constant 0 : index
    %c0_110 = arith.constant 0 : index
    %95 = vector.load %arg11[%c0_109, %c0_110] : memref<1x128xf32, #tpu.memory_space<vmem>>, vector<1x128xf32>
    %96 = arith.addf %94, %95 : vector<1x128xf32>
    %97 = math.tanh %96 : vector<1x128xf32>
    %c0_111 = arith.constant 0 : index
    %c0_112 = arith.constant 0 : index
    %98 = vector.load %arg12[%c0_111, %c0_112] : memref<128x128xf32, #tpu.memory_space<vmem>>, vector<128x128xf32>
    %cst_113 = arith.constant dense<0.000000e+00> : vector<1x128xf32>
    %99 = tpu.matmul %97, %98, %cst_113 {dimension_numbers = #tpu.dot_dimension_numbers<[1], [0], [0], [1], [0, 0, 1, 1], [], []>} : vector<1x128xf32>, vector<128x128xf32>, vector<1x128xf32> -> vector<1x128xf32>
    %c0_114 = arith.constant 0 : index
    %c0_115 = arith.constant 0 : index
    %100 = vector.load %arg13[%c0_114, %c0_115] : memref<1x128xf32, #tpu.memory_space<vmem>>, vector<1x128xf32>
    %101 = arith.addf %99, %100 : vector<1x128xf32>
    %102 = math.tanh %101 : vector<1x128xf32>
    %c0_116 = arith.constant 0 : index
    %c0_117 = arith.constant 0 : index
    %103 = vector.load %arg14[%c0_116, %c0_117] : memref<128x128xf32, #tpu.memory_space<vmem>>, vector<128x128xf32>
    %cst_118 = arith.constant dense<0.000000e+00> : vector<1x128xf32>
    %104 = tpu.matmul %102, %103, %cst_118 {dimension_numbers = #tpu.dot_dimension_numbers<[1], [0], [0], [1], [0, 0, 1, 1], [], []>} : vector<1x128xf32>, vector<128x128xf32>, vector<1x128xf32> -> vector<1x128xf32>
    %c0_119 = arith.constant 0 : index
    %c0_120 = arith.constant 0 : index
    %105 = vector.load %arg15[%c0_119, %c0_120] : memref<1x128xf32, #tpu.memory_space<vmem>>, vector<1x128xf32>
    %106 = arith.addf %104, %105 : vector<1x128xf32>
    %c0_121 = arith.constant 0 : index
    %c0_122 = arith.constant 0 : index
    %c0_123 = arith.constant 0 : index
    %107 = vector.load %arg16[%c0_121, %c0_122, %c0_123] : memref<1x1x128xf32, #tpu.memory_space<vmem>>, vector<1x1x128xf32>
    %108 = vector.shape_cast %107 : vector<1x1x128xf32> to vector<1x128xf32>
    %109 = vector.shape_cast %106 : vector<1x128xf32> to vector<1x1x128xf32>
    tpu.vector_store %arg16[%c0_121, %c0_122, %c0_123], %109 {strides = array<i32>} : memref<1x1x128xf32, #tpu.memory_space<vmem>>, vector<1x1x128xf32>,
    return
  }
  func.func @transform_0(%arg0: i32) -> (i32, i32, i32) {
    %c0_i32 = arith.constant 0 : i32
    %c0_i32_0 = arith.constant 0 : i32
    %c0_i32_1 = arith.constant 0 : i32
    return %arg0, %c0_i32, %c0_i32_0 : i32, i32, i32
  }
  func.func @transform_1(%arg0: i32) -> (i32, i32, i32) {
    %c0_i32 = arith.constant 0 : i32
    %c0_i32_0 = arith.constant 0 : i32
    %c0_i32_1 = arith.constant 0 : i32
    %c0_i32_2 = arith.constant 0 : i32
    return %c0_i32, %c0_i32_0, %c0_i32_1 : i32, i32, i32
  }
  func.func @transform_2(%arg0: i32) -> (i32, i32) {
    %c0_i32 = arith.constant 0 : i32
    %c0_i32_0 = arith.constant 0 : i32
    %c0_i32_1 = arith.constant 0 : i32
    return %c0_i32, %c0_i32_0 : i32, i32
  }
  func.func @transform_3(%arg0: i32) -> (i32, i32) {
    %c0_i32 = arith.constant 0 : i32
    %c0_i32_0 = arith.constant 0 : i32
    %c0_i32_1 = arith.constant 0 : i32
    return %c0_i32, %c0_i32_0 : i32, i32
  }
  func.func @transform_4(%arg0: i32) -> (i32, i32) {
    %c0_i32 = arith.constant 0 : i32
    %c0_i32_0 = arith.constant 0 : i32
    %c0_i32_1 = arith.constant 0 : i32
    return %c0_i32, %c0_i32_0 : i32, i32
  }
  func.func @transform_5(%arg0: i32) -> (i32, i32, i32) {
    %c0_i32 = arith.constant 0 : i32
    %c0_i32_0 = arith.constant 0 : i32
    %c0_i32_1 = arith.constant 0 : i32
    %c0_i32_2 = arith.constant 0 : i32
    return %c0_i32, %c0_i32_0, %c0_i32_1 : i32, i32, i32
  }
  func.func @transform_6(%arg0: i32) -> (i32, i32) {
    %c0_i32 = arith.constant 0 : i32
    %c0_i32_0 = arith.constant 0 : i32
    %c0_i32_1 = arith.constant 0 : i32
    return %c0_i32, %c0_i32_0 : i32, i32
  }
  func.func @transform_7(%arg0: i32) -> (i32, i32) {
    %c0_i32 = arith.constant 0 : i32
    %c0_i32_0 = arith.constant 0 : i32
    %c0_i32_1 = arith.constant 0 : i32
    return %c0_i32, %c0_i32_0 : i32, i32
  }
  func.func @transform_8(%arg0: i32) -> (i32, i32) {
    %c0_i32 = arith.constant 0 : i32
    %c0_i32_0 = arith.constant 0 : i32
    %c0_i32_1 = arith.constant 0 : i32
    return %c0_i32, %c0_i32_0 : i32, i32
  }
  func.func @transform_9(%arg0: i32) -> (i32, i32, i32) {
    %c0_i32 = arith.constant 0 : i32
    %c0_i32_0 = arith.constant 0 : i32
    %c0_i32_1 = arith.constant 0 : i32
    %c0_i32_2 = arith.constant 0 : i32
    return %c0_i32, %c0_i32_0, %c0_i32_1 : i32, i32, i32
  }
  func.func @transform_10(%arg0: i32) -> (i32, i32) {
    %c0_i32 = arith.constant 0 : i32
    %c0_i32_0 = arith.constant 0 : i32
    %c0_i32_1 = arith.constant 0 : i32
    return %c0_i32, %c0_i32_0 : i32, i32
  }
  func.func @transform_11(%arg0: i32) -> (i32, i32) {
    %c0_i32 = arith.constant 0 : i32
    %c0_i32_0 = arith.constant 0 : i32
    %c0_i32_1 = arith.constant 0 : i32
    return %c0_i32, %c0_i32_0 : i32, i32
  }
  func.func @transform_12(%arg0: i32) -> (i32, i32) {
    %c0_i32 = arith.constant 0 : i32
    %c0_i32_0 = arith.constant 0 : i32
    %c0_i32_1 = arith.constant 0 : i32
    return %c0_i32, %c0_i32_0 : i32, i32
  }
  func.func @transform_13(%arg0: i32) -> (i32, i32) {
    %c0_i32 = arith.constant 0 : i32
    %c0_i32_0 = arith.constant 0 : i32
    %c0_i32_1 = arith.constant 0 : i32
    return %c0_i32, %c0_i32_0 : i32, i32
  }
  func.func @transform_14(%arg0: i32) -> (i32, i32) {
    %c0_i32 = arith.constant 0 : i32
    %c0_i32_0 = arith.constant 0 : i32
    %c0_i32_1 = arith.constant 0 : i32
    return %c0_i32, %c0_i32_0 : i32, i32
  }
  func.func @transform_15(%arg0: i32) -> (i32, i32, i32) {
    %c0_i32 = arith.constant 0 : i32
    %c0_i32_0 = arith.constant 0 : i32
    %c0_i32_1 = arith.constant 0 : i32
    return %arg0, %c0_i32, %c0_i32_0 : i32, i32, i32
  }
}

</mosaic_0001>

<bundles_post_ra>
// kernel: lenet_forward.1
= control target key start
LH: loop header
LB: loop body
LE: loop exit
PB: predicated region body
PF: predicated region fallthrough
CT: control target
= control target key end

     0   :  { %20 = vsyncpa [#allocation5], 0  ;;  %s4670_s0 = inlined_call_operand.vmem [shape: f32[2,32,32], index: 0, kind: input, shape index: {}]   ;;  %s4671_s1 = inlined_call_operand.vmem [shape: f32[5,32,168], index: 1, kind: input, shape index: {}]   ;;  %s4672_s2 = inlined_call_operand.vmem [shape: f32[1,168], index: 2, kind: input, shape index: {}]   ;;  %s4673_s3 = inlined_call_operand.vmem [shape: f32[14,28], index: 3, kind: input, shape index: {}]   ;;  %s4674_s4 = inlined_call_operand.vmem [shape: f32[168,84], index: 4, kind: input, shape index: {}]   ;;  %s4675_s5 = inlined_call_operand.vmem [shape: f32[5,84,160], index: 5, kind: input, shape index: {}]   ;;  %s4676_s6 = inlined_call_operand.vmem [shape: f32[1,160], index: 6, kind: input, shape index: {}]   ;;  %s4677_s7 = inlined_call_operand.vmem [shape: f32[5,10], index: 7, kind: input, shape index: {}]   ;;  %s4678_s8 = inlined_call_operand.vmem [shape: f32[160,80], index: 8, kind: input, shape index: {}]   ;;  %s4679_s9 = inlined_call_operand.vmem [shape: f32[5,80,128], index: 9, kind: input, shape index: {}]   ;;  %s4680_s10 = inlined_call_operand.vmem [shape: f32[1,128], index: 10, kind: input, shape index: {}]   ;;  %s4681_s11 = inlined_call_operand.vmem [shape: f32[128,128], index: 11, kind: input, shape index: {}]   ;;  %s4682_s12 = inlined_call_operand.vmem [shape: f32[1,128], index: 12, kind: input, shape index: {}]   ;;  %s4683_s13 = inlined_call_operand.vmem [shape: f32[128,128], index: 13, kind: input, shape index: {}]   ;;  %s4684_s14 = inlined_call_operand.vmem [shape: f32[1,128], index: 14, kind: input, shape index: {}]   ;;  %s4685_s15 = inlined_call_operand.hbm [shape: f32[2,1,128], index: 15, kind: output, shape index: {}]  }
   0x1   :  { %22 = vsyncpa [#allocation5 + $0x1], 0  ;;  %s3481_s18 = smov 0   ;;  %s3483_s19 = smov 0  }
   0x2   :  { %s3485_s20 = smov 0   ;;  %s3487_s21 = smov 0  }
   0x3 LB: > { %4691 = sst [smem:[#allocation7_spill]] %s3384_s18  ;;  %s3502_s22 = sadd.s32 4294967295, %s3396_s21   ;;  %s3396_s21 = sphi %s3487_s21, %s4700_s21   ;;  %s3392_s20 = sphi %s3485_s20, %s4702_s20   ;;  %s3388_s19 = sphi %s3483_s19, %s4704_s19   ;;  %s3384_s18 = sphi %s3481_s18, %s4703_s18  }
   0x4   : > { %4692 = sst [smem:[#allocation8_spill]] %s3392_s20  ;;  %s2768_s23 = sadd.s32 4294967294, %s3396_s21  }
   0x5   : > { %s3506_s24 = sadd.s32 1, %s3396_s21   ;;  %s355_s25 = sadd.s32 1, %s3392_s20 }
   0x6   : > { %4693 = sst [smem:[#allocation9_spill]] %s3506_s24  ;;  %s352_s26 = ssub.s32 %s3396_s21, %s3506_s24 }
   0x7   : > { %p365_p0 = scmp.ne.s32.totalorder %s3392_s20, %s3388_s19  ;;  %p353_p1 = scmp.eq.s32.totalorder %s352_s26, 0 }
   0x8   : > { %p366_p2 = scmp.eq.s32.totalorder %s3502_s22, 1  ;;  %p371_p3 = scmp.ne.s32.totalorder %s3388_s19, %s3384_s18 }
   0x9   : > { %p372_p4 = scmp.eq.s32.totalorder %s2768_s23, 1  ;;  %p2771_p7 = scmp.ge.s32.totalorder %s3396_s21, 1 }
   0xa   : > { %s3517_s27 = scalar_select %p353_p1, %s3392_s20, %s355_s25  }
   0xb   : > { %p3519_p5 = por %p366_p2, %p365_p0  ;;  %p3523_p6 = por %p372_p4, %p371_p3 }
   0xc   : > { %4694 = sst [smem:[#allocation10_spill]] %s3517_s27  ;;  %p440_p8 = scmp.lt.s32.totalorder %s3396_s21, 3 }
   0xd   : > { %s4696_s29 = scalar_select %p3523_p6, 1, 0 }
   0xe   : > { %p441_p9 = pnand %p2771_p7, %p440_p8 }
   0xf   : > { %4697 = sst [smem:[#allocation11_spill]] %s4696_s29  ;;  %p487_p10 = scmp.lt.s32.totalorder (!%p441_p9), %s3502_s22, 1 }
  0x10   : > { %444 = sbr.rel (%p441_p9) target bundleno = 2036 (0x7f4), region = 80  ;;  %s485_s29 = sand.u32 (!%p441_p9), 1, %s3388_s19  }
  0x11   : > { %s2989_s17 = sshll.u32 (!%p441_p9), %s3502_s22, 4  ;;  %s486_s25 = scalar_lea.vmem (!%p441_p9), [#allocation4], %s485_s29 }
  0x12   : > { %s2713_s26 = sshll.u32 (!%p441_p9), %s486_s25, 4  ;;  %s4635_s27 = scalar_lea.hbm (!%p441_p9), %s4685_s15, %s2989_s17  ;;  %s2714_s26 = int_to_ptr.vmem [resolvable:$true] %s2713_s26 }
  0x13   : > { %s3400_s18 = smov (!%p441_p9), [#allocation4]  }
  0x15   : > { %v2781_v0 = vld [vmem:[%s4671_s1 + $0x78] sm:$0xff]  ;;  %v2780_v2 = vld [vmem:[%s4671_s1 + $0x70] sm:$0xff]  ;;  %v2779_v4 = vld [vmem:[%s4671_s1 + $0x68] sm:$0xff]  ;;  %s488_s24 = scalar_select %p487_p10, %s3502_s22, 1  ;;  %vm517_vm0 = vcmask 261120   ;;  %v3398_v18 = vmov 0.0  }
  0x16   : > { %v503_v1 = vld [vmem:[%s4671_s1 + $0x38] sm:$0xff]  ;;  %554 = vmatprep.subr.mxu0 %v2781_v0  ;;  %v502_v3 = vld [vmem:[%s4671_s1 + $0x30] sm:$0xff]  ;;  %v501_v5 = vld [vmem:[%s4671_s1 + $0x28] sm:$0xff]  ;;  %594 = vmatprep.mubr.f32.mxu0 %v3398_v18  ;;  %vm1123_vm1 = vcmask 1043456   ;;  %vm1116_vm2 = vcmask 228352   ;;  %vm1228_vm3 = vcmask 326656  }
  0x17   : > { %655 = vmatprep.subr.mxu1 %v503_v1  ;;  %555 = vmatpush1.msra.mxu0 %v2780_v2  ;;  %v2778_v6 = vld [vmem:[%s4671_s1 + $0x60] sm:$0xff]  ;;  %v2777_v8 = vld [vmem:[%s4671_s1 + $0x58] sm:$0xff]  ;;  %v2776_v10 = vld [vmem:[%s4671_s1 + $0x50] sm:$0xff]  ;;  %s2992_s30 = sshll.u32 %s488_s24, 5  ;;  %vm1310_vm4 = vcmask 687104   ;;  %vm1312_vm5 = vcmask 685056  }
  0x18   : > { %656 = vmatpush1.msra.mxu1 %v502_v3  ;;  %v500_v7 = vld [vmem:[%s4671_s1 + $0x20] sm:$0xff]  ;;  %556 = vmatprep.subr.mxu0 %v2779_v4  ;;  %v499_v9 = vld [vmem:[%s4671_s1 + $0x18] sm:$0xff]  ;;  %v498_v11 = vld [vmem:[%s4671_s1 + $0x10] sm:$0xff]  ;;  %s3579_s23 = scalar_lea.vmem %s4670_s0, %s2992_s30  ;;  %vm1920_vm6 = vcmask 1041408   ;;  %vm1916_vm7 = vcmask 80896   ;;  %vm3399_vm8 = vmmov 0  }
  0x19   : > { %657 = vmatprep.subr.mxu1 %v501_v5  ;;  %557 = vmatpush1.msra.mxu0 %v2778_v6  ;;  %v2775_v12 = vld [vmem:[%s4671_s1 + $0x48] sm:$0xff]  ;;  %v2774_v14 = vld [vmem:[%s4671_s1 + $0x40] sm:$0xff]  ;;  %v2797_v19 = vld [vmem:[%s4671_s1 + $0xb8] sm:$0xff]  ;;  %vm2091_vm9 = vcmask 651264   ;;  %vm2116_vm10 = vcmask 654336   ;;  %s2701_s30 = scalar_lea.sflag [#allocation5], %s485_s29 }
  0x1a   : > { %658 = vmatpush1.msra.mxu1 %v500_v7  ;;  %v497_v13 = vld [vmem:[%s4671_s1 + $0x8] sm:$0xff]  ;;  %558 = vmatprep.subr.mxu0 %v2777_v8  ;;  %v496_v15 = vld [vmem:[%s4671_s1] sm:$0xff]  ;;  %v2809_v20 = vld [vmem:[%s4671_s1 + $0xf8] sm:$0xff]  ;;  %s3340_s22 = sshll.u32 %s3400_s18, 4  ;;  %s3341_s22 = int_to_ptr.vmem [resolvable:$false] %s3340_s22 }
  0x1b   : > { %659 = vmatprep.subr.mxu1 %v499_v9  ;;  %559 = vmatpush1.msra.mxu0 %v2776_v10  ;;  %v504_v16 = vld [vmem:[%s3579_s23 + $0x1] sm:$0xff]  ;;  %v2796_v21 = vld [vmem:[%s4671_s1 + $0xb0] sm:$0xff]  ;;  %v2793_v31 = vld [vmem:[%s4671_s1 + $0x98] sm:$0xff]  ;;  %s3342_s16 = scalar_lea.vmem %s3341_s22, 32  ;;  %p3343_p0 = scmp.lt.s32.totalorder %s2714_s26, %s3341_s22 }
  0x1c   : > { %660 = vmatpush1.msra.mxu1 %v498_v11  ;;  %560 = vmatprep.subr.mxu0 %v2775_v12  ;;  %v492_v17 = vld [vmem:[%s3579_s23] sm:$0xff]  ;;  %v2808_v22 = vld [vmem:[%s4671_s1 + $0xf0] sm:$0xff]  ;;  %v493_v24 = vld [vmem:[%s3579_s23 + $0x8] sm:$0xff] }
  0x1d   : > { %661 = vmatprep.subr.mxu1 %v497_v13  ;;  %561 = vmatpush1.msra.mxu0 %v2774_v14  ;;  %v505_v23 = vld [vmem:[%s3579_s23 + $0x9] sm:$0xff]  ;;  %v2794_v27 = vld [vmem:[%s4671_s1 + $0xa0] sm:$0xff]  ;;  %v506_v29 = vld [vmem:[%s3579_s23 + $0x11] sm:$0xff] }
  0x1e   : > { %662 = vmatpush1.msra.mxu1 %v496_v15  ;;  %695 = vmatprep.mubr.f32.mxu1 %v3398_v18  ;;  %v2795_v25 = vld [vmem:[%s4671_s1 + $0xa8] sm:$0xff]  ;;  %v2806_v28 = vld [vmem:[%s4671_s1 + $0xe0] sm:$0xff]  ;;  %v494_v30 = vld [vmem:[%s3579_s23 + $0x10] sm:$0xff] }
  0x1f   : > { %2782 = vmatmul.mubr.msk.f32.vlgmr.msra.gmra.mxu0 %vm517_vm0, %v504_v16  ;;  %2786 = vmatmul.mubr.msk.f32.vlgmr.msra.gmra.mxu1 %vm517_vm0, %v492_v17  ;;  %v2807_v26 = vld [vmem:[%s4671_s1 + $0xe8] sm:$0xff]  ;;  %v2805_v32 = vld [vmem:[%s4671_s1 + $0xd8] sm:$0xff]  ;;  %v2792_v33 = vld [vmem:[%s4671_s1 + $0x90] sm:$0xff] }
  0x20   : > { %600 = vmatprep.mubr.f32.mxu0 %v3398_v18  ;;  %701 = vmatprep.mubr.f32.mxu1 %v3398_v18  ;;  %v2804_v34 = vld [vmem:[%s4671_s1 + $0xd0] sm:$0xff]  ;;  %v507_v35 = vld [vmem:[%s3579_s23 + $0x19] sm:$0xf]  ;;  %v2791_v37 = vld [vmem:[%s4671_s1 + $0x88] sm:$0xff] }
  0x21   : > { %769 = vmatprep.subr.mxu0 %v2797_v19  ;;  %891 = vmatprep.subr.mxu1 %v2809_v20  ;;  %v495_v36 = vld [vmem:[%s3579_s23 + $0x18] sm:$0xf]  ;;  %v2790_v38 = vld [vmem:[%s4671_s1 + $0x80] sm:$0xff]  ;;  %v2803_v39 = vld [vmem:[%s4671_s1 + $0xc8] sm:$0xff] }
  0x22   : > { %770 = vmatpush1.msra.mxu0 %v2796_v21  ;;  %892 = vmatpush1.msra.mxu1 %v2808_v22  ;;  %v2802_v40 = vld [vmem:[%s4671_s1 + $0xc0] sm:$0xff]  ;;  %v2821_v43 = vld [vmem:[%s4671_s1 + $0x138] sm:$0xff]  ;;  %v2820_v44 = vld [vmem:[%s4671_s1 + $0x130] sm:$0xff] }
  0x23   : > { %2783 = vmatmul.mubr.msk.f32.gmra.mxu0 %vm517_vm0, %v505_v23  ;;  %2787 = vmatmul.mubr.msk.f32.gmra.mxu1 %vm517_vm0, %v493_v24  ;;  %v720_v41 = vld [vmem:[%s3579_s23 + $0x2] sm:$0xff]  ;;  %v721_v45 = vld [vmem:[%s3579_s23 + $0xa] sm:$0xff]  ;;  %v722_v49 = vld [vmem:[%s3579_s23 + $0x12] sm:$0xff] }
  0x24   : > { %606 = vmatprep.mubr.f32.mxu0 %v3398_v18  ;;  %707 = vmatprep.mubr.f32.mxu1 %v3398_v18  ;;  %v842_v42 = vld [vmem:[%s3579_s23 + $0x3] sm:$0xff]  ;;  %v843_v46 = vld [vmem:[%s3579_s23 + $0xb] sm:$0xff]  ;;  %v844_v50 = vld [vmem:[%s3579_s23 + $0x13] sm:$0xff] }
  0x25   : > { %771 = vmatprep.subr.mxu0 %v2795_v25  ;;  %893 = vmatprep.subr.mxu1 %v2807_v26  ;;  %v2819_v47 = vld [vmem:[%s4671_s1 + $0x128] sm:$0xff]  ;;  %v2818_v48 = vld [vmem:[%s4671_s1 + $0x120] sm:$0xff]  ;;  %v2817_v51 = vld [vmem:[%s4671_s1 + $0x118] sm:$0xff] }
  0x26   : > { %772 = vmatpush1.msra.mxu0 %v2794_v27  ;;  %894 = vmatpush1.msra.mxu1 %v2806_v28  ;;  %v2816_v52 = vld [vmem:[%s4671_s1 + $0x110] sm:$0xff]  ;;  %v2815_v53 = vld [vmem:[%s4671_s1 + $0x108] sm:$0xff]  ;;  %v723_v54 = vld [vmem:[%s3579_s23 + $0x1a] sm:$0xf] }
  0x27   : > { %2784 = vmatmul.mubr.msk.f32.gmra.mxu0 %vm517_vm0, %v506_v29  ;;  %2788 = vmatmul.mubr.msk.f32.gmra.mxu1 %vm517_vm0, %v494_v30  ;;  %v845_v55 = vld [vmem:[%s3579_s23 + $0x1b] sm:$0xf]  ;;  %v2814_v56 = vld [vmem:[%s4671_s1 + $0x100] sm:$0xff]  ;;  %v965_v58 = vld [vmem:[%s3579_s23 + $0xc] sm:$0xff] }
  0x28   : > { %612 = vmatprep.mubr.f32.mxu0 %v3398_v18  ;;  %713 = vmatprep.mubr.f32.mxu1 %v3398_v18  ;;  %v964_v57 = vld [vmem:[%s3579_s23 + $0x4] sm:$0xff]  ;;  %v966_v59 = vld [vmem:[%s3579_s23 + $0x14] sm:$0xff]  ;;  %v967_v60 = vld [vmem:[%s3579_s23 + $0x1c] sm:$0xf]  ;;  %s3336_s23 = scalar_lea.vmem %s2714_s26, 16 }
  0x29   : > { %773 = vmatprep.subr.mxu0 %v2793_v31  ;;  %895 = vmatprep.subr.mxu1 %v2805_v32  ;;  %v1222_v61 = vld [vmem:[%s4674_s4 + $0x78] sm:$0xff]  ;;  %v1221_v62 = vld [vmem:[%s4674_s4 + $0x70] sm:$0xff]  ;;  %v1220_v63 = vld [vmem:[%s4674_s4 + $0x68] sm:$0xff]  ;;  %p3337_p11 = scmp.ne.s32.totalorder %s2714_s26, %s3336_s23  ;;  %p3344_p1 = scmp.lt.s32.totalorder %s3342_s16, %s3336_s23 }
  0x2a   : > { %774 = vmatpush1.msra.mxu0 %v2792_v33  ;;  %896 = vmatpush1.msra.mxu1 %v2804_v34  ;;  %v1219_v0 = vld [vmem:[%s4674_s4 + $0x60] sm:$0xff]  ;;  %v1218_v1 = vld [vmem:[%s4674_s4 + $0x58] sm:$0xff]  ;;  %v1217_v2 = vld [vmem:[%s4674_s4 + $0x50] sm:$0xff] }
  0x2b   : > { %2785 = vmatmul.mubr.msk.f32.gmra.mxu0 %vm517_vm0, %v507_v35  ;;  %2789 = vmatmul.mubr.msk.f32.gmra.mxu1 %vm517_vm0, %v495_v36  ;;  %v1216_v3 = vld [vmem:[%s4674_s4 + $0x48] sm:$0xff]  ;;  %v1215_v4 = vld [vmem:[%s4674_s4 + $0x40] sm:$0xff]  ;;  %v1214_v5 = vld [vmem:[%s4674_s4 + $0x38] sm:$0xff]  ;;  %p3338_p12 = pnand %p3337_p11, %p3519_p5  ;;  %p3345_p2 = por %p3344_p1, %p3343_p0 }
  0x2c   : > { %775 = vmatprep.subr.mxu0 %v2791_v37  ;;  %809 = vmatprep.mubr.f32.mxu0 %v3398_v18  ;;  %v1213_v6 = vld [vmem:[%s4674_s4 + $0x30] sm:$0xff]  ;;  %v1212_v7 = vld [vmem:[%s4674_s4 + $0x28] sm:$0xff]  ;;  %v1211_v8 = vld [vmem:[%s4674_s4 + $0x20] sm:$0xff] }
  0x2d   : > { %776 = vmatpush1.msra.mxu0 %v2790_v38  ;;  %897 = vmatprep.subr.mxu1 %v2803_v39  ;;  %v1210_v9 = vld [vmem:[%s4674_s4 + $0x18] sm:$0xff]  ;;  %v1209_v10 = vld [vmem:[%s4674_s4 + $0x10] sm:$0xff]  ;;  %v1208_v11 = vld [vmem:[%s4674_s4 + $0x8] sm:$0xff]  ;;  %p3339_p13 = pneg %p3338_p12 }
  0x2e   : > { %898 = vmatpush1.msra.mxu1 %v2802_v40  ;;  %931 = vmatprep.mubr.f32.mxu1 %v3398_v18  ;;  %v1207_v12 = vld [vmem:[%s4674_s4] sm:$0xff]  ;;  %v1226_v14 = vld [vmem:[%s4674_s4 + $0x98] sm:$0xff]  ;;  %v1225_v15 = vld [vmem:[%s4674_s4 + $0x90] sm:$0xff] }
  0x2f   : > { %2798 = vmatmul.mubr.msk.f32.vlgmr.msra.gmra.mxu0 %vm517_vm0, %v720_v41  ;;  %2810 = vmatmul.mubr.msk.f32.vlgmr.msra.gmra.mxu1 %vm517_vm0, %v842_v42  ;;  %v1227_v13 = vld [vmem:[%s4674_s4 + $0xa0] sm:$0xff]  ;;  %p3346_p3 = pnand %p3345_p2, %p3339_p13 }
  0x30   : > { %815 = vmatprep.mubr.f32.mxu0 %v3398_v18  ;;  %937 = vmatprep.mubr.f32.mxu1 %v3398_v18 }
  0x31   : > { %1013 = vmatprep.subr.mxu0 %v2821_v43 }
  0x32   : > { %1014 = vmatpush1.msra.mxu0 %v2820_v44 }
  0x33   : > { %2799 = vmatmul.mubr.msk.f32.gmra.mxu0 %vm517_vm0, %v721_v45  ;;  %2811 = vmatmul.mubr.msk.f32.gmra.mxu1 %vm517_vm0, %v843_v46 }
  0x34   : > { %821 = vmatprep.mubr.f32.mxu0 %v3398_v18  ;;  %943 = vmatprep.mubr.f32.mxu1 %v3398_v18 }
  0x35   : > { %1015 = vmatprep.subr.mxu0 %v2819_v47 }
  0x36   : > { %1016 = vmatpush1.msra.mxu0 %v2818_v48  ;;  %v1088_v48 = vlaneseq }
  0x37   : > { %2800 = vmatmul.mubr.msk.f32.gmra.mxu0 %vm517_vm0, %v722_v49  ;;  %2812 = vmatmul.mubr.msk.f32.gmra.mxu1 %vm517_vm0, %v844_v50 }
  0x38   : > { %827 = vmatprep.mubr.f32.mxu0 %v3398_v18  ;;  %1017 = vmatprep.subr.mxu0 %v2817_v51 }
  0x39   : > { %949 = vmatprep.mubr.f32.mxu1 %v3398_v18  ;;  %1018 = vmatpush1.msra.mxu0 %v2816_v52 }
  0x3a   : > { %1019 = vmatprep.subr.mxu0 %v2815_v53 }
  0x3b   : > { %2801 = vmatmul.mubr.msk.f32.gmra.mxu0 %vm517_vm0, %v723_v54  ;;  %2813 = vmatmul.mubr.msk.f32.gmra.mxu1 %vm517_vm0, %v845_v55  ;;  %v3794_v55 = vshrl.u32 %v1088_v48, 7  ;;  %v1114_v48 = vld [vmem:[%s4673_s3] sm:$0xff] }
  0x3c   : > { %1020 = vmatpush1.msra.mxu0 %v2814_v56  ;;  %1053 = vmatprep.mubr.f32.mxu0 %v3398_v18 }
  0x3d   : > { %1194 = vmatprep.mubr.f32.mxu1 %v3398_v18  ;;  %1235 = vmatprep.subr.mxu0 %v3398_v18 }
  0x3f   : > { %2822 = vmatmul.mubr.msk.f32.vlgmr.msra.gmra.mxu0 %vm517_vm0, %v964_v57 }
  0x40   : > { %1059 = vmatprep.mubr.f32.mxu0 %v3398_v18  ;;  %1236 = vmatpush1.msra.mxu0 %v1222_v61 }
  0x41   : > { %1237 = vmatprep.subr.mxu0 %v3398_v18 }
  0x42   : > { %1238 = vmatpush1.msra.mxu0 %v1221_v62 }
  0x43   : > { %2823 = vmatmul.mubr.msk.f32.gmra.mxu0 %vm517_vm0, %v965_v58  ;;  %1239 = vmatprep.subr.mxu0 %v3398_v18 }
  0x44   : > { %1065 = vmatprep.mubr.f32.mxu0 %v3398_v18  ;;  %1240 = vmatpush1.msra.mxu0 %v1220_v63 }
  0x45   : > { %1241 = vmatprep.subr.mxu0 %v3398_v18 }
  0x46   : > { %1242 = vmatpush1.msra.mxu0 %v1219_v0 }
  0x47   : > { %2824 = vmatmul.mubr.msk.f32.gmra.mxu0 %vm517_vm0, %v966_v59  ;;  %1243 = vmatprep.subr.mxu0 %v3398_v18 }
  0x48   : > { %1071 = vmatprep.mubr.f32.mxu0 %v3398_v18  ;;  %1244 = vmatpush1.msra.mxu0 %v1218_v1 }
  0x49   : > { %1245 = vmatprep.subr.mxu0 %v3398_v18 }
  0x4a   : > { %1246 = vmatpush1.msra.mxu0 %v1217_v2 }
  0x4b   : > { %2825 = vmatmul.mubr.msk.f32.gmra.mxu0 %vm517_vm0, %v967_v60  ;;  %1247 = vmatprep.subr.mxu0 %v3398_v18 }
  0x4c   : > { %1248 = vmatpush1.msra.mxu0 %v1216_v3 }
  0x4d   : > { %1249 = vmatprep.subr.mxu0 %v3398_v18 }
  0x4e   : > { %1250 = vmatpush1.msra.mxu0 %v1215_v4 }
  0x4f   : > { %1251 = vmatprep.subr.mxu0 %v3398_v18 }
  0x50   : > { %1252 = vmatpush1.msra.mxu0 %v1214_v5 }
  0x51   : > { %1253 = vmatprep.subr.mxu0 %v3398_v18 }
  0x52   : > { %1254 = vmatpush1.msra.mxu0 %v1213_v6  ;;  %v1090_v6 = vsub.s32 0, %v3794_v55 }
  0x53   : > { %1255 = vmatprep.subr.mxu0 %v3398_v18 }
  0x54   : > { %1256 = vmatpush1.msra.mxu0 %v1212_v7 }
  0x55   : > { %1257 = vmatprep.subr.mxu0 %v3398_v18 }
  0x56   : > { %1258 = vmatpush1.msra.mxu0 %v1211_v8 }
  0x57   : > { %1259 = vmatprep.subr.mxu0 %v3398_v18 }
  0x58   : > { %1260 = vmatpush1.msra.mxu0 %v1210_v9 }
  0x59   : > { %1261 = vmatprep.subr.mxu0 %v3398_v18 }
  0x5a   : > { %1262 = vmatpush1.msra.mxu0 %v1209_v10 }
  0x5b   : > { %1263 = vmatprep.subr.mxu0 %v3398_v18 }
  0x5c   : > { %1264 = vmatpush1.msra.mxu0 %v1208_v11  ;;  %v1086_v11 = vld [vmem:[%s4672_s2] sm:$0x3] }
  0x5d   : > { %1265 = vmatprep.subr.mxu0 %v3398_v18 }
  0x5e   : > { %1266 = vmatpush1.msra.mxu0 %v1207_v12  ;;  %v1094_v12 = vsub.s32 1, %v3794_v55  ;;  %v1915_v55 = vld [vmem:[%s4677_s7] sm:$0x1f] }
  0x5f   : > { %1289 = vmatprep.subr.mxu0 %v3398_v18 }
  0x60   : > { %1290 = vmatpush2.msra.mxu0 %v1227_v13 }
  0x61   : > { %1291 = vmatprep.subr.mxu0 %v3398_v18 }
  0x62   : > { %1292 = vmatpush2.msra.mxu0 %v1226_v14 }
  0x63   : > { %1293 = vmatprep.subr.mxu0 %v3398_v18 }
  0x64   : > { %1294 = vmatpush2.msra.mxu0 %v1225_v15 }
  0x65   : > { %1295 = vmatprep.subr.mxu0 %v3398_v18 }
  0xdf   : > { %v596_v16 = vpop.f32.mrf.mxu0  ;;  %v697_v17 = vpop.f32.mrf.mxu1 }
  0xe0   : > { %v698_v3 = vadd.f32 %v697_v17, %v596_v16 }
  0xe1   : > { %v598_v19 = vpop.f32.mrf.mxu0  ;;  %v699_v20 = vpop.f32.mrf.mxu1 }
  0xe2   : > { %v700_v0 = vadd.f32 %v699_v20, %v598_v19 }
  0xe3   : > { %v602_v21 = vpop.f32.mrf.mxu0  ;;  %v703_v22 = vpop.f32.mrf.mxu1 }
  0xe4   : > { %v704_v61 = vadd.f32 %v703_v22, %v602_v21  ;;  %v1091_v22 = vrot.slane %v1086_v11, %v1090_v6 }
  0xe5   : > { %v604_v23 = vpop.f32.mrf.mxu0  ;;  %v705_v24 = vpop.f32.mrf.mxu1 }
  0xe6   : > { %v706_v57 = vadd.f32 %v705_v24, %v604_v23 }
  0xe7   : > { %v608_v25 = vpop.f32.mrf.mxu0  ;;  %v709_v26 = vpop.f32.mrf.mxu1 }
  0xe8   : > { %v710_v53 = vadd.f32 %v709_v26, %v608_v25  ;;  %v1095_v26 = vrot.slane %v1086_v11, %v1094_v12  ;;  %v2877_v11 = vld [vmem:[%s4675_s5 + $0x1d8] sm:$0xff] }
  0xe9   : > { %v610_v27 = vpop.f32.mrf.mxu0  ;;  %v711_v28 = vpop.f32.mrf.mxu1 }
  0xea   : > { %v712_v51 = vadd.f32 %v711_v28, %v610_v27 }
  0xeb   : > { %v614_v29 = vpop.f32.mrf.mxu0  ;;  %v715_v30 = vpop.f32.mrf.mxu1 }
  0xec   : > { %v716_v52 = vadd.f32 %v715_v30, %v614_v29 }
  0xed   : > { %v616_v31 = vpop.f32.mrf.mxu0  ;;  %v717_v32 = vpop.f32.mrf.mxu1 }
  0xee   : > { %v718_v58 = vadd.f32 %v717_v32, %v616_v31 }
  0xef   : > { %v811_v33 = vpop.f32.mrf.mxu0  ;;  %v933_v34 = vpop.f32.mrf.mxu1 }
  0xf0   : > { %v834_v13 = vadd.f32 %v811_v33, %v698_v3  ;;  %v2882_v3 = vld [vmem:[%s4675_s5 + $0x200] sm:$0xf] }
  0xf1   : > { %v813_v35 = vpop.f32.mrf.mxu0  ;;  %v935_v36 = vpop.f32.mrf.mxu1 }
  0xf2   : > { %v835_v8 = vadd.f32 %v813_v35, %v700_v0  ;;  %v956_v29 = vadd.f32 %v933_v34, %v834_v13  ;;  %v2844_v0 = vld [vmem:[%s4675_s5 + $0x110] sm:$0xff] }
  0xf3   : > { %v817_v37 = vpop.f32.mrf.mxu0  ;;  %v939_v39 = vpop.f32.mrf.mxu1  ;;  %v2876_v13 = vld [vmem:[%s4675_s5 + $0x1d0] sm:$0xff] }
  0xf4   : > { %v836_v4 = vadd.f32 %v817_v37, %v704_v61  ;;  %v957_v25 = vadd.f32 %v935_v36, %v835_v8  ;;  %v2847_v61 = vld [vmem:[%s4675_s5 + $0x128] sm:$0xff] }
  0xf5   : > { %v819_v38 = vpop.f32.mrf.mxu0  ;;  %v941_v41 = vpop.f32.mrf.mxu1  ;;  %v2879_v8 = vld [vmem:[%s4675_s5 + $0x1e8] sm:$0xff] }
  0xf6   : > { %v837_v1 = vadd.f32 %v819_v38, %v706_v57  ;;  %v958_v21 = vadd.f32 %v939_v39, %v836_v4  ;;  %v2851_v57 = vld [vmem:[%s4675_s5 + $0x148] sm:$0xff]  ;;  %v2881_v4 = vld [vmem:[%s4675_s5 + $0x1f8] sm:$0xff] }
  0xf7   : > { %v823_v40 = vpop.f32.mrf.mxu0  ;;  %v945_v44 = vpop.f32.mrf.mxu1 }
  0xf8   : > { %v838_v62 = vadd.f32 %v823_v40, %v710_v53  ;;  %v959_v19 = vadd.f32 %v941_v41, %v837_v1  ;;  %v2853_v53 = vld [vmem:[%s4675_s5 + $0x158] sm:$0xf] }
  0xf9   : > { %v825_v42 = vpop.f32.mrf.mxu0  ;;  %v947_v47 = vpop.f32.mrf.mxu1 }
  0xfa   : > { %v839_v59 = vadd.f32 %v825_v42, %v712_v51  ;;  %v960_v14 = vadd.f32 %v945_v44, %v838_v62  ;;  %v1224_v51 = vld [vmem:[%s4674_s4 + $0x88] sm:$0xff]  ;;  %v2846_v62 = vld [vmem:[%s4675_s5 + $0x120] sm:$0xff] }
  0xfb   : > { %v829_v43 = vpop.f32.mrf.mxu0  ;;  %v951_v54 = vpop.f32.mrf.mxu1  ;;  %1296 = vmatpush2.msra.mxu0 %v1224_v51 }
  0xfc   : > { %v840_v60 = vadd.f32 %v829_v43, %v716_v52  ;;  %v961_v9 = vadd.f32 %v947_v47, %v839_v59  ;;  %1297 = vmatprep.subr.mxu0 %v3398_v18  ;;  %v1223_v52 = vld [vmem:[%s4674_s4 + $0x80] sm:$0xff]  ;;  %v2849_v59 = vld [vmem:[%s4675_s5 + $0x138] sm:$0xff] }
  0xfd   : > { %v831_v45 = vpop.f32.mrf.mxu0  ;;  %v953_v5 = vpop.f32.mrf.mxu1  ;;  %1298 = vmatpush2.msra.mxu0 %v1223_v52  ;;  %v2933_v52 = vld [vmem:[%s4675_s5 + $0x358] sm:$0xff] }
  0xfe   : > { %v841_v2 = vadd.f32 %v831_v45, %v718_v58  ;;  %v962_v10 = vadd.f32 %v951_v54, %v840_v60  ;;  %v2883_v54 = vld [vmem:[%s4675_s5 + $0x208] sm:$0xf]  ;;  %v2850_v58 = vld [vmem:[%s4675_s5 + $0x140] sm:$0xff]  ;;  %v2848_v60 = vld [vmem:[%s4675_s5 + $0x130] sm:$0xff] }
  0xff   : > { %v1055_v46 = vpop.f32.mrf.mxu0  ;;  %2884 = vmatprep.subr.msk.mxu0 %vm1123_vm1, %v2883_v54  ;;  %v2932_v54 = vld [vmem:[%s4675_s5 + $0x350] sm:$0xff] }
 0x100   : > { %v963_v20 = vadd.f32 %v953_v5, %v841_v2  ;;  %v1078_v37 = vadd.f32 %v1055_v46, %v956_v29  ;;  %v2837_v29 = vld [vmem:[%s4675_s5 + $0xd8] sm:$0xff] }
 0x101   : > { %v1057_v49 = vpop.f32.mrf.mxu0 }
 0x102   : > { %v1079_v32 = vadd.f32 %v1057_v49, %v957_v25  ;;  %v1098_v36 = vadd.f32 %v1091_v22, %v1078_v37  ;;  %v2839_v25 = vld [vmem:[%s4675_s5 + $0xe8] sm:$0xff]  ;;  %v2834_v37 = vld [vmem:[%s4675_s5 + $0xc0] sm:$0xff] }
 0x103   : > { %v1061_v50 = vpop.f32.mrf.mxu0 }
 0x104   : > { %v1080_v30 = vadd.f32 %v1061_v50, %v958_v21  ;;  %v1099_v41 = vadd.f32 %v1095_v26, %v1079_v32  ;;  %v1115_v50 = vld [vmem:[%s4673_s3 + $0x8] sm:$0x3f]  ;;  %v2841_v21 = vld [vmem:[%s4675_s5 + $0xf8] sm:$0xff]  ;;  %v2866_v32 = vld [vmem:[%s4675_s5 + $0x180] sm:$0xff] }
 0x105   : > { %v1063_v56 = vpop.f32.mrf.mxu0 }
 0x106   : > { %v1081_v27 = vadd.f32 %v1063_v56, %v959_v19  ;;  %v1100_v40 = vadd.f32 %v1091_v22, %v1080_v30  ;;  %v2852_v56 = vld [vmem:[%s4675_s5 + $0x150] sm:$0xf]  ;;  %v2843_v19 = vld [vmem:[%s4675_s5 + $0x108] sm:$0xff] }
 0x107   : > { %v1067_v63 = vpop.f32.mrf.mxu0  ;;  %v2867_v30 = vld [vmem:[%s4675_s5 + $0x188] sm:$0xff] }
 0x108   : > { %v1082_v23 = vadd.f32 %v1067_v63, %v960_v14  ;;  %v1101_v39 = vadd.f32 %v1095_v26, %v1081_v27  ;;  %v2845_v63 = vld [vmem:[%s4675_s5 + $0x118] sm:$0xff]  ;;  %v2875_v14 = vld [vmem:[%s4675_s5 + $0x1c8] sm:$0xff]  ;;  %v2838_v27 = vld [vmem:[%s4675_s5 + $0xe0] sm:$0xff] }
 0x109   : > { %v1069_v7 = vpop.f32.mrf.mxu0 }
 0x10a   : > { %v1083_v16 = vadd.f32 %v1069_v7, %v961_v9  ;;  %v1102_v38 = vadd.f32 %v1091_v22, %v1082_v23  ;;  %v2880_v7 = vld [vmem:[%s4675_s5 + $0x1f0] sm:$0xff] }
 0x10b   : > { %v1073_v15 = vpop.f32.mrf.mxu0  ;;  %v2840_v23 = vld [vmem:[%s4675_s5 + $0xf0] sm:$0xff] }
 0x10c   : > { %v1084_v17 = vadd.f32 %v1073_v15, %v962_v10  ;;  %v1103_v33 = vadd.f32 %v1095_v26, %v1083_v16  ;;  %v2878_v10 = vld [vmem:[%s4675_s5 + $0x1e0] sm:$0xff] }
 0x10d   : > { %v1075_v24 = vpop.f32.mrf.mxu0  ;;  %v2874_v15 = vld [vmem:[%s4675_s5 + $0x1c0] sm:$0xff] }
 0x10e   : > { %v1085_v28 = vadd.f32 %v1075_v24, %v963_v20  ;;  %v1104_v31 = vadd.f32 %v1091_v22, %v1084_v17  ;;  %v2873_v20 = vld [vmem:[%s4675_s5 + $0x1b8] sm:$0xff]  ;;  %v2842_v16 = vld [vmem:[%s4675_s5 + $0x100] sm:$0xff]  ;;  %v2872_v17 = vld [vmem:[%s4675_s5 + $0x1b0] sm:$0xff] }
 0x10f   : > { %v2871_v22 = vld [vmem:[%s4675_s5 + $0x1a8] sm:$0xff]  ;;  %v2870_v24 = vld [vmem:[%s4675_s5 + $0x1a0] sm:$0xff] }
 0x110   : > { %v1105_v35 = vadd.f32 %v1095_v26, %v1085_v28  ;;  %v2869_v26 = vld [vmem:[%s4675_s5 + $0x198] sm:$0xff]  ;;  %v2868_v28 = vld [vmem:[%s4675_s5 + $0x190] sm:$0xff] }
 0x112   : > { %3308 = vtanh.f32 %v1105_v35  ;;  %v2865_v35 = vld [vmem:[%s4675_s5 + $0x178] sm:$0xff] }
 0x113   : > { %3310 = vtanh.f32 %v1104_v31  ;;  %v2836_v31 = vld [vmem:[%s4675_s5 + $0xd0] sm:$0xff] }
 0x114   : > { %3312 = vtanh.f32 %v1103_v33  ;;  %v2835_v33 = vld [vmem:[%s4675_s5 + $0xc8] sm:$0xff] }
 0x115   : > { %3314 = vtanh.f32 %v1102_v38  ;;  %v2864_v38 = vld [vmem:[%s4675_s5 + $0x170] sm:$0xff] }
 0x116   : > { %3316 = vtanh.f32 %v1101_v39  ;;  %v2833_v39 = vld [vmem:[%s4675_s5 + $0xb8] sm:$0xff] }
 0x117   : > { %3318 = vtanh.f32 %v1100_v40  ;;  %v2863_v40 = vld [vmem:[%s4675_s5 + $0x168] sm:$0xff] }
 0x118   : > { %3320 = vtanh.f32 %v1099_v41  ;;  %v2832_v41 = vld [vmem:[%s4675_s5 + $0xb0] sm:$0xff] }
 0x119   : > { %3322 = vtanh.f32 %v1098_v36  ;;  %v2862_v36 = vld [vmem:[%s4675_s5 + $0x160] sm:$0xff] }
 0x11f   : > { %v3309_v34 = vpop.eup %3308 }
 0x120   : > { %v3311_v42 = vpop.eup %3310  ;;  %2826 = vmatprep.subr.msk.mxu1 %vm1123_vm1, %v3309_v34  ;;  %v1337_v34 = vld [vmem:[%s4675_s5 + $0xa8] sm:$0xf] }
 0x121   : > { %v3313_v43 = vpop.eup %3312  ;;  %2827 = vmatpush1.msk.msra.mxu1 %vm1123_vm1, %v3311_v42  ;;  %v2935_v42 = vld [vmem:[%s4675_s5 + $0x368] sm:$0xf] }
 0x122   : > { %v3315_v44 = vpop.eup %3314  ;;  %1156 = vmatprep.subr.mxu1 %v3313_v43 }
 0x123   : > { %v3317_v45 = vpop.eup %3316  ;;  %1157 = vmatpush1.msra.mxu1 %v3315_v44 }
 0x124   : > { %v3319_v46 = vpop.eup %3318  ;;  %1158 = vmatprep.subr.mxu1 %v3317_v45 }
 0x125   : > { %v3321_v47 = vpop.eup %3320  ;;  %1159 = vmatpush1.msra.mxu1 %v3319_v46 }
 0x126   : > { %v3323_v49 = vpop.eup %3322  ;;  %1160 = vmatprep.subr.mxu1 %v3321_v47  ;;  %v1336_v47 = vld [vmem:[%s4675_s5 + $0xa0] sm:$0xf] }
 0x127   : > { %1161 = vmatpush1.msra.mxu1 %v3323_v49  ;;  %v1335_v49 = vld [vmem:[%s4675_s5 + $0x98] sm:$0xff] }
 0x128   : > { %2828 = vmatmul.mubr.msk.f32.vlgmr.msra.gmra.mxu1 %vm1116_vm2, %v1114_v48  ;;  %2854 = vmatprep.subr.msk.mxu1 %vm1123_vm1, %v2853_v53  ;;  %v2934_v48 = vld [vmem:[%s4675_s5 + $0x360] sm:$0xf]  ;;  %v1334_v53 = vld [vmem:[%s4675_s5 + $0x90] sm:$0xff] }
 0x129   : > { %1200 = vmatprep.mubr.f32.mxu1 %v3398_v18  ;;  %2855 = vmatpush1.msk.msra.mxu1 %vm1123_vm1, %v2852_v56  ;;  %v1333_v56 = vld [vmem:[%s4675_s5 + $0x88] sm:$0xff] }
 0x12a   : > { %1387 = vmatprep.subr.mxu1 %v2851_v57  ;;  %v2931_v57 = vld [vmem:[%s4675_s5 + $0x348] sm:$0xff] }
 0x12b   : > { %1388 = vmatpush1.msra.mxu1 %v2850_v58  ;;  %v1332_v58 = vld [vmem:[%s4675_s5 + $0x80] sm:$0xff] }
 0x12c   : > { %2829 = vmatmul.mubr.msk.f32.gmra.mxu1 %vm1116_vm2, %v1115_v50  ;;  %1389 = vmatprep.subr.mxu1 %v2849_v59  ;;  %v2930_v59 = vld [vmem:[%s4675_s5 + $0x340] sm:$0xff] }
 0x12d   : > { %1439 = vmatprep.mubr.f32.mxu1 %v3398_v18  ;;  %1390 = vmatpush1.msra.mxu1 %v2848_v60  ;;  %v1331_v60 = vld [vmem:[%s4675_s5 + $0x78] sm:$0xff] }
 0x12e   : > { %1391 = vmatprep.subr.mxu1 %v2847_v61 }
 0x12f   : > { %1392 = vmatpush1.msra.mxu1 %v2846_v62 }
 0x130   : > { %1393 = vmatprep.subr.mxu1 %v2845_v63  ;;  %v2929_v63 = vld [vmem:[%s4675_s5 + $0x338] sm:$0xff] }
 0x131   : > { %1394 = vmatpush1.msra.mxu1 %v2844_v0  ;;  %v1330_v0 = vld [vmem:[%s4675_s5 + $0x70] sm:$0xff] }
 0x132   : > { %1395 = vmatprep.subr.mxu1 %v2843_v19  ;;  %v1323_v19 = vld [vmem:[%s4675_s5 + $0x38] sm:$0xff] }
 0x133   : > { %1396 = vmatpush1.msra.mxu1 %v2842_v16  ;;  %v1322_v16 = vld [vmem:[%s4675_s5 + $0x30] sm:$0xff] }
 0x134   : > { %1397 = vmatprep.subr.mxu1 %v2841_v21  ;;  %v1321_v21 = vld [vmem:[%s4675_s5 + $0x28] sm:$0xff] }
 0x135   : > { %1398 = vmatpush1.msra.mxu1 %v2840_v23  ;;  %v1320_v23 = vld [vmem:[%s4675_s5 + $0x20] sm:$0xff] }
 0x136   : > { %1399 = vmatprep.subr.mxu1 %v2839_v25  ;;  %v1319_v25 = vld [vmem:[%s4675_s5 + $0x18] sm:$0xff] }
 0x137   : > { %1400 = vmatpush1.msra.mxu1 %v2838_v27  ;;  %v1318_v27 = vld [vmem:[%s4675_s5 + $0x10] sm:$0xff] }
 0x138   : > { %1401 = vmatprep.subr.mxu1 %v2837_v29  ;;  %v1317_v29 = vld [vmem:[%s4675_s5 + $0x8] sm:$0xff] }
 0x139   : > { %1402 = vmatpush1.msra.mxu1 %v2836_v31  ;;  %v1316_v31 = vld [vmem:[%s4675_s5] sm:$0xff] }
 0x13a   : > { %1403 = vmatprep.subr.mxu1 %v2835_v33  ;;  %v2909_v33 = vld [vmem:[%s4675_s5 + $0x2b8] sm:$0xf] }
 0x13b   : > { %1404 = vmatpush1.msra.mxu1 %v2834_v37 }
 0x13c   : > { %1405 = vmatprep.subr.mxu1 %v2833_v39 }
 0x13d   : > { %1406 = vmatpush1.msra.mxu1 %v2832_v41  ;;  %v2905_v41 = vld [vmem:[%s4675_s5 + $0x298] sm:$0xff] }
 0x13e   : > { %2858 = vmatprep.subr.msk.mxu1 %vm1123_vm1, %v1337_v34 }
 0x1e8   : > { %v1196_v1 = vpop.f32.mrf.mxu1 }
 0x1ea   : > { %v1198_v2 = vpop.f32.mrf.mxu1 }
 0x1eb   : > { %2830 = vmatprep.mubr.msk.f32.mxu0 %vm1228_vm3, %v1198_v2  ;;  %v1329_v2 = vld [vmem:[%s4675_s5 + $0x68] sm:$0xff] }
 0x1ec   : > { %v1202_v5 = vpop.f32.mrf.mxu1  ;;  %1300 = vmatmul.mubr.f32.vlgmr.msra.gmra.mxu0 %v1196_v1  ;;  %v2928_v1 = vld [vmem:[%s4675_s5 + $0x330] sm:$0xff] }
 0x1ed   : > { %2885 = vmatpush1.msk.msra.mxu0 %vm1123_vm1, %v2882_v3  ;;  %v2927_v3 = vld [vmem:[%s4675_s5 + $0x328] sm:$0xff] }
 0x1ee   : > { %v1204_v9 = vpop.f32.mrf.mxu1  ;;  %1590 = vmatprep.subr.mxu0 %v2881_v4  ;;  %v1328_v4 = vld [vmem:[%s4675_s5 + $0x60] sm:$0xff] }
 0x1ef   : > { %2831 = vmatprep.mubr.msk.f32.mxu0 %vm1228_vm3, %v1204_v9  ;;  %1591 = vmatpush1.msra.mxu0 %v2880_v7  ;;  %v1327_v7 = vld [vmem:[%s4675_s5 + $0x58] sm:$0xff]  ;;  %v1326_v9 = vld [vmem:[%s4675_s5 + $0x50] sm:$0xff] }
 0x1f0   : > { %1305 = vmatmul.mubr.f32.gmra.mxu0 %v1202_v5  ;;  %1592 = vmatprep.subr.mxu0 %v2879_v8  ;;  %v2926_v5 = vld [vmem:[%s4675_s5 + $0x320] sm:$0xff]  ;;  %v2925_v8 = vld [vmem:[%s4675_s5 + $0x318] sm:$0xff] }
 0x1f1   : > { %1593 = vmatpush1.msra.mxu0 %v2878_v10  ;;  %1642 = vmatprep.mubr.f32.mxu0 %v3398_v18  ;;  %v2924_v10 = vld [vmem:[%s4675_s5 + $0x310] sm:$0xff] }
 0x1f2   : > { %1594 = vmatprep.subr.mxu0 %v2877_v11  ;;  %v1325_v11 = vld [vmem:[%s4675_s5 + $0x48] sm:$0xff] }
 0x1f3   : > { %1595 = vmatpush1.msra.mxu0 %v2876_v13  ;;  %v2923_v13 = vld [vmem:[%s4675_s5 + $0x308] sm:$0xff] }
 0x1f4   : > { %1596 = vmatprep.subr.mxu0 %v2875_v14  ;;  %v1324_v14 = vld [vmem:[%s4675_s5 + $0x40] sm:$0xff] }
 0x1f5   : > { %1597 = vmatpush1.msra.mxu0 %v2874_v15  ;;  %v2922_v15 = vld [vmem:[%s4675_s5 + $0x300] sm:$0xff] }
 0x1f6   : > { %1598 = vmatprep.subr.mxu0 %v2873_v20  ;;  %v2921_v20 = vld [vmem:[%s4675_s5 + $0x2f8] sm:$0xff] }
 0x1f7   : > { %1599 = vmatpush1.msra.mxu0 %v2872_v17  ;;  %v2920_v17 = vld [vmem:[%s4675_s5 + $0x2f0] sm:$0xff] }
 0x1f8   : > { %1600 = vmatprep.subr.mxu0 %v2871_v22  ;;  %v2919_v22 = vld [vmem:[%s4675_s5 + $0x2e8] sm:$0xff] }
 0x1f9   : > { %1601 = vmatpush1.msra.mxu0 %v2870_v24  ;;  %v2918_v24 = vld [vmem:[%s4675_s5 + $0x2e0] sm:$0xff] }
 0x1fa   : > { %1602 = vmatprep.subr.mxu0 %v2869_v26  ;;  %v2917_v26 = vld [vmem:[%s4675_s5 + $0x2d8] sm:$0xff] }
 0x1fb   : > { %1603 = vmatpush1.msra.mxu0 %v2868_v28  ;;  %v2916_v28 = vld [vmem:[%s4675_s5 + $0x2d0] sm:$0xff] }
 0x1fc   : > { %1604 = vmatprep.subr.mxu0 %v2867_v30  ;;  %v2915_v30 = vld [vmem:[%s4675_s5 + $0x2c8] sm:$0xff] }
 0x1fd   : > { %1605 = vmatpush1.msra.mxu0 %v2866_v32  ;;  %v2914_v32 = vld [vmem:[%s4675_s5 + $0x2c0] sm:$0xff] }
 0x1fe   : > { %1606 = vmatprep.subr.mxu0 %v2865_v35  ;;  %v2908_v35 = vld [vmem:[%s4675_s5 + $0x2b0] sm:$0xf] }
 0x1ff   : > { %1607 = vmatpush1.msra.mxu0 %v2864_v38  ;;  %v2907_v38 = vld [vmem:[%s4675_s5 + $0x2a8] sm:$0xff] }
 0x200   : > { %1608 = vmatprep.subr.mxu0 %v2863_v40  ;;  %v2906_v40 = vld [vmem:[%s4675_s5 + $0x2a0] sm:$0xff] }
 0x201   : > { %1609 = vmatpush1.msra.mxu0 %v2862_v36  ;;  %v2904_v36 = vld [vmem:[%s4675_s5 + $0x290] sm:$0xff] }
 0x202   : > { %2936 = vmatprep.subr.msk.mxu0 %vm1123_vm1, %v2935_v42  ;;  %v2903_v42 = vld [vmem:[%s4675_s5 + $0x288] sm:$0xff] }
 0x2ac   : > { %v1301_v43 = vpop.f32.mrf.mxu0 }
 0x2ad   : > { %1311 = vst.msk [vmem:[#allocation2] sm:$0xff] %vm1310_vm4, %v1301_v43 }
 0x2ae   : > { %v1303_v44 = vpop.f32.mrf.mxu0 }
 0x2af   : > { %v2902_v44 = vld [vmem:[%s4675_s5 + $0x280] sm:$0xff] }
 0x2b0   : > { %v1306_v45 = vpop.f32.mrf.mxu0 }
 0x2b1   : > { %1313 = vst.msk [vmem:[#allocation2 + $0x8] sm:$0x3f] %vm1312_vm5, %v1306_v45  ;;  %v2901_v45 = vld [vmem:[%s4675_s5 + $0x278] sm:$0xff] }
 0x2b2   : > { %v1308_v46 = vpop.f32.mrf.mxu0 }
 0x2b3   : > { %v2900_v46 = vld [vmem:[%s4675_s5 + $0x270] sm:$0xff] }
 0x2b4   : > { %v1314_v37 = vld [vmem:[#allocation2] sm:$0xff] }
 0x2b8   : > { %v1338_v50 = vld [vmem:[#allocation2 + $0x1] sm:$0xff]  ;;  %v1339_v61 = vld [vmem:[#allocation2 + $0x9] sm:$0x3]  ;;  %v1778_v43 = vld [vmem:[#allocation2 + $0xc] sm:$0x3] }
 0x2b9   : > { %v1541_v51 = vld [vmem:[#allocation2 + $0x2] sm:$0xff]  ;;  %2856 = vmatmul.mubr.msk.f32.vlgmr.msra.gmra.mxu1 %vm1310_vm4, %v1338_v50  ;;  %v1542_v62 = vld [vmem:[#allocation2 + $0xa] sm:$0x3]  ;;  %v2896_v50 = vld [vmem:[%s4675_s5 + $0x250] sm:$0xff] }
 0x2ba   : > { %2886 = vmatmul.mubr.msk.f32.vlgmr.msra.gmra.mxu0 %vm1310_vm4, %v1541_v51  ;;  %2859 = vmatpush1.msk.msra.mxu1 %vm1123_vm1, %v1336_v47  ;;  %v1777_v39 = vld [vmem:[#allocation2 + $0x4] sm:$0xff] }
 0x2bb   : > { %2937 = vmatpush1.msk.msra.mxu0 %vm1123_vm1, %v2934_v48  ;;  %1476 = vmatprep.subr.mxu1 %v1335_v49  ;;  %v1315_v34 = vld [vmem:[#allocation2 + $0x8] sm:$0x3]  ;;  %v2898_v48 = vld [vmem:[%s4675_s5 + $0x260] sm:$0xff]  ;;  %v2897_v49 = vld [vmem:[%s4675_s5 + $0x258] sm:$0xff] }
 0x2bc   : > { %1826 = vmatprep.subr.mxu0 %v2933_v52  ;;  %1477 = vmatpush1.msra.mxu1 %v1334_v53  ;;  %v2899_v47 = vld [vmem:[%s4675_s5 + $0x268] sm:$0xff]  ;;  %v2894_v52 = vld [vmem:[%s4675_s5 + $0x240] sm:$0xff]  ;;  %v2893_v53 = vld [vmem:[%s4675_s5 + $0x238] sm:$0xff] }
 0x2bd   : > { %1827 = vmatpush1.msra.mxu0 %v2932_v54  ;;  %1445 = vmatprep.mubr.f32.mxu1 %v3398_v18  ;;  %v2895_v51 = vld [vmem:[%s4675_s5 + $0x248] sm:$0xff]  ;;  %v2892_v54 = vld [vmem:[%s4675_s5 + $0x230] sm:$0xff] }
 0x2be   : > { %1478 = vmatprep.subr.mxu1 %v1333_v56  ;;  %1648 = vmatprep.mubr.f32.mxu0 %v3398_v18  ;;  %v2891_v56 = vld [vmem:[%s4675_s5 + $0x228] sm:$0xff] }
 0x2bf   : > { %1828 = vmatprep.subr.mxu0 %v2931_v57  ;;  %2857 = vmatmul.mubr.msk.f32.gmra.mxu1 %vm1310_vm4, %v1339_v61  ;;  %v2890_v57 = vld [vmem:[%s4675_s5 + $0x220] sm:$0xff]  ;;  %v1660_v61 = vld [vmem:[#allocation2 + $0xb] sm:$0x3] }
 0x2c0   : > { %2887 = vmatmul.mubr.msk.f32.gmra.mxu0 %vm1310_vm4, %v1542_v62  ;;  %1479 = vmatpush1.msra.mxu1 %v1332_v58  ;;  %v2889_v58 = vld [vmem:[%s4675_s5 + $0x218] sm:$0xff] }
 0x2c1   : > { %1829 = vmatpush1.msra.mxu0 %v2930_v59  ;;  %1480 = vmatprep.subr.mxu1 %v1331_v60  ;;  %v2888_v59 = vld [vmem:[%s4675_s5 + $0x210] sm:$0xff]  ;;  %v1659_v60 = vld [vmem:[#allocation2 + $0x3] sm:$0xff] }
 0x2c2   : > { %1830 = vmatprep.subr.mxu0 %v2929_v63  ;;  %1481 = vmatpush1.msra.mxu1 %v1330_v0 }
 0x2c3   : > { %1831 = vmatpush1.msra.mxu0 %v2928_v1  ;;  %1482 = vmatprep.subr.mxu1 %v1329_v2 }
 0x2c4   : > { %1832 = vmatprep.subr.mxu0 %v2927_v3  ;;  %1483 = vmatpush1.msra.mxu1 %v1328_v4 }
 0x2c5   : > { %1833 = vmatpush1.msra.mxu0 %v2926_v5  ;;  %1484 = vmatprep.subr.mxu1 %v1327_v7 }
 0x2c6   : > { %1834 = vmatprep.subr.mxu0 %v2925_v8  ;;  %1485 = vmatpush1.msra.mxu1 %v1326_v9 }
 0x2c7   : > { %1835 = vmatpush1.msra.mxu0 %v2924_v10  ;;  %1486 = vmatprep.subr.mxu1 %v1325_v11 }
 0x2c8   : > { %1836 = vmatprep.subr.mxu0 %v2923_v13  ;;  %1487 = vmatpush1.msra.mxu1 %v1324_v14 }
 0x2c9   : > { %1837 = vmatpush1.msra.mxu0 %v2922_v15  ;;  %1488 = vmatprep.subr.mxu1 %v1323_v19 }
 0x2ca   : > { %1838 = vmatprep.subr.mxu0 %v2921_v20  ;;  %1489 = vmatpush1.msra.mxu1 %v1322_v16 }
 0x2cb   : > { %1839 = vmatpush1.msra.mxu0 %v2920_v17  ;;  %1490 = vmatprep.subr.mxu1 %v1321_v21 }
 0x2cc   : > { %1840 = vmatprep.subr.mxu0 %v2919_v22  ;;  %1491 = vmatpush1.msra.mxu1 %v1320_v23 }
 0x2cd   : > { %1841 = vmatpush1.msra.mxu0 %v2918_v24  ;;  %1492 = vmatprep.subr.mxu1 %v1319_v25 }
 0x2ce   : > { %1842 = vmatprep.subr.mxu0 %v2917_v26  ;;  %1493 = vmatpush1.msra.mxu1 %v1318_v27 }
 0x2cf   : > { %1843 = vmatpush1.msra.mxu0 %v2916_v28  ;;  %1494 = vmatprep.subr.mxu1 %v1317_v29  ;;  %v1895_v28 = vld [vmem:[%s4676_s6] sm:$0x3] }
 0x2d0   : > { %1844 = vmatprep.subr.mxu0 %v2915_v30  ;;  %1495 = vmatpush1.msra.mxu1 %v1316_v31 }
 0x2d1   : > { %1528 = vmatprep.mubr.f32.mxu1 %v3398_v18  ;;  %1845 = vmatpush1.msra.mxu0 %v2914_v32 }
 0x2d2   : > { %1878 = vmatprep.mubr.f32.mxu0 %v3398_v18  ;;  %2860 = vmatmul.mubr.msk.f32.vlgmr.msra.gmra.mxu1 %vm1310_vm4, %v1314_v37 }
 0x2d3   : > { %2910 = vmatprep.subr.msk.mxu1 %vm1123_vm1, %v2909_v33  ;;  %2938 = vmatmul.mubr.msk.f32.vlgmr.msra.gmra.mxu0 %vm1310_vm4, %v1777_v39  ;;  %v1904_v33 = vrot.slane %v1895_v28, %v1094_v12 }
 0x2d4   : > { %2911 = vmatpush1.msk.msra.mxu1 %vm1123_vm1, %v2908_v35  ;;  %1534 = vmatprep.mubr.f32.mxu1 %v3398_v18 }
 0x2d5   : > { %1708 = vmatprep.subr.mxu1 %v2907_v38  ;;  %1884 = vmatprep.mubr.f32.mxu0 %v3398_v18 }
 0x2d6   : > { %1709 = vmatpush1.msra.mxu1 %v2906_v40  ;;  %3082 = vmatprep.subr.mxu0 %v3398_v18  ;;  %v1900_v40 = vrot.slane %v1895_v28, %v1090_v6 }
 0x2d7   : > { %2861 = vmatmul.mubr.msk.f32.gmra.mxu1 %vm1310_vm4, %v1315_v34  ;;  %1710 = vmatprep.subr.mxu1 %v2905_v41 }
 0x2d8   : > { %2939 = vmatmul.mubr.msk.f32.gmra.mxu0 %vm1310_vm4, %v1778_v43  ;;  %1711 = vmatpush1.msra.mxu1 %v2904_v36 }
 0x2d9   : > { %1712 = vmatprep.subr.mxu1 %v2903_v42  ;;  %1760 = vmatprep.mubr.f32.mxu1 %v3398_v18 }
 0x2da   : > { %1713 = vmatpush1.msra.mxu1 %v2902_v44  ;;  %3102 = vmatprep.mubr.msk.f32.mxu0 %vm3399_vm8, %v3398_v18 }
 0x2db   : > { %1714 = vmatprep.subr.mxu1 %v2901_v45 }
 0x2dc   : > { %1715 = vmatpush1.msra.mxu1 %v2900_v46  ;;  %v2013_v46 = vld [vmem:[%s4678_s8 + $0x78] sm:$0xff] }
 0x2dd   : > { %1716 = vmatprep.subr.mxu1 %v2899_v47  ;;  %v2012_v47 = vld [vmem:[%s4678_s8 + $0x70] sm:$0xff] }
 0x2de   : > { %1717 = vmatpush1.msra.mxu1 %v2898_v48  ;;  %v2011_v48 = vld [vmem:[%s4678_s8 + $0x68] sm:$0xff] }
 0x2df   : > { %1718 = vmatprep.subr.mxu1 %v2897_v49  ;;  %v2010_v49 = vld [vmem:[%s4678_s8 + $0x60] sm:$0xff] }
 0x2e0   : > { %1719 = vmatpush1.msra.mxu1 %v2896_v50  ;;  %v2009_v50 = vld [vmem:[%s4678_s8 + $0x58] sm:$0xff] }
 0x2e1   : > { %1720 = vmatprep.subr.mxu1 %v2895_v51  ;;  %v2008_v51 = vld [vmem:[%s4678_s8 + $0x50] sm:$0xff] }
 0x2e2   : > { %1721 = vmatpush1.msra.mxu1 %v2894_v52  ;;  %v2007_v52 = vld [vmem:[%s4678_s8 + $0x48] sm:$0xff] }
 0x2e3   : > { %1722 = vmatprep.subr.mxu1 %v2893_v53  ;;  %v2006_v53 = vld [vmem:[%s4678_s8 + $0x40] sm:$0xff] }
 0x2e4   : > { %1723 = vmatpush1.msra.mxu1 %v2892_v54  ;;  %v2005_v54 = vld [vmem:[%s4678_s8 + $0x38] sm:$0xff] }
 0x2e5   : > { %1724 = vmatprep.subr.mxu1 %v2891_v56  ;;  %v2004_v56 = vld [vmem:[%s4678_s8 + $0x30] sm:$0xff] }
 0x2e6   : > { %1725 = vmatpush1.msra.mxu1 %v2890_v57  ;;  %v2003_v57 = vld [vmem:[%s4678_s8 + $0x28] sm:$0xff] }
 0x2e7   : > { %1726 = vmatprep.subr.mxu1 %v2889_v58  ;;  %v2002_v58 = vld [vmem:[%s4678_s8 + $0x20] sm:$0xff] }
 0x2e8   : > { %1727 = vmatpush1.msra.mxu1 %v2888_v59  ;;  %v2001_v59 = vld [vmem:[%s4678_s8 + $0x18] sm:$0xff] }
 0x2e9   : > { %2912 = vmatmul.mubr.msk.f32.vlgmr.msra.gmra.mxu1 %vm1310_vm4, %v1659_v60  ;;  %v2000_v60 = vld [vmem:[%s4678_s8 + $0x10] sm:$0xff] }
 0x2ea   : > { %1766 = vmatprep.mubr.f32.mxu1 %v3398_v18 }
 0x2ed   : > { %2913 = vmatmul.mubr.msk.f32.gmra.mxu1 %vm1310_vm4, %v1660_v61  ;;  %v1999_v61 = vld [vmem:[%s4678_s8 + $0x8] sm:$0xff] }
 0x2ee   : > { %1991 = vmatprep.mubr.f32.mxu1 %v3398_v18 }
 0x379   : > { %v1441_v62 = vpop.f32.mrf.mxu1 }
 0x37a   : > { %v1644_v1 = vpop.f32.mrf.mxu0 }
 0x37b   : > { %v1443_v63 = vpop.f32.mrf.mxu1 }
 0x37c   : > { %v1646_v3 = vpop.f32.mrf.mxu0 }
 0x37f   : > { %v1447_v0 = vpop.f32.mrf.mxu1 }
 0x380   : > { %v1650_v5 = vpop.f32.mrf.mxu0 }
 0x381   : > { %v1449_v2 = vpop.f32.mrf.mxu1 }
 0x382   : > { %v1652_v8 = vpop.f32.mrf.mxu0 }
 0x392   : > { %v1530_v4 = vpop.f32.mrf.mxu1 }
 0x393   : > { %v1880_v10 = vpop.f32.mrf.mxu0  ;;  %v1531_v13 = vadd.f32 %v1530_v4, %v1441_v62  ;;  %v1998_v62 = vld [vmem:[%s4678_s8] sm:$0xff]  ;;  %v2952_v4 = vld [vmem:[%s4679_s9 + $0x90] sm:$0xff] }
 0x394   : > { %v1532_v7 = vpop.f32.mrf.mxu1 }
 0x395   : > { %v1533_v11 = vadd.f32 %v1532_v7, %v1443_v63  ;;  %v1882_v19 = vpop.f32.mrf.mxu0  ;;  %v1655_v21 = vadd.f32 %v1644_v1, %v1531_v13  ;;  %v2017_v63 = vld [vmem:[%s4678_s8 + $0x98] sm:$0xff]  ;;  %v2015_v1 = vld [vmem:[%s4678_s8 + $0x88] sm:$0xff]  ;;  %v2950_v7 = vld [vmem:[%s4679_s9 + $0x80] sm:$0xff] }
 0x396   : > { %v2965_v13 = vld [vmem:[%s4679_s9 + $0xe8] sm:$0xff] }
 0x397   : > { %v1536_v9 = vpop.f32.mrf.mxu1  ;;  %v1656_v17 = vadd.f32 %v1646_v3, %v1533_v11  ;;  %v2953_v3 = vld [vmem:[%s4679_s9 + $0x98] sm:$0xff] }
 0x398   : > { %v1537_v15 = vadd.f32 %v1536_v9, %v1447_v0  ;;  %v1886_v25 = vpop.f32.mrf.mxu0  ;;  %v2016_v0 = vld [vmem:[%s4678_s8 + $0x90] sm:$0xff]  ;;  %3083 = vmatpush3.msra.mxu0 %v2953_v3  ;;  %v2535_v3 = vld [vmem:[%s4681_s11 + $0x58] sm:$0xff] }
 0x399   : > { %v1538_v14 = vpop.f32.mrf.mxu1  ;;  %3084 = vmatprep.subr.mxu0 %v3398_v18  ;;  %v2948_v9 = vld [vmem:[%s4679_s9 + $0x70] sm:$0xff] }
 0x39a   : > { %v1539_v16 = vadd.f32 %v1538_v14, %v1449_v2  ;;  %v1657_v24 = vadd.f32 %v1650_v5, %v1537_v15  ;;  %v1888_v38 = vpop.f32.mrf.mxu0  ;;  %v2014_v2 = vld [vmem:[%s4678_s8 + $0x80] sm:$0xff]  ;;  %3085 = vmatpush3.msra.mxu0 %v2952_v4  ;;  %v2951_v5 = vld [vmem:[%s4679_s9 + $0x88] sm:$0xff]  ;;  %v2963_v15 = vld [vmem:[%s4679_s9 + $0xd8] sm:$0xff] }
 0x39b   : > { %3086 = vmatprep.subr.mxu0 %v3398_v18  ;;  %v2964_v14 = vld [vmem:[%s4679_s9 + $0xe0] sm:$0xff]  ;;  %v2534_v4 = vld [vmem:[%s4681_s11 + $0x50] sm:$0xff] }
 0x39c   : > { %v1658_v30 = vadd.f32 %v1652_v8, %v1539_v16  ;;  %3087 = vmatpush3.msra.mxu0 %v2951_v5  ;;  %v2949_v8 = vld [vmem:[%s4679_s9 + $0x78] sm:$0xff]  ;;  %v2960_v16 = vld [vmem:[%s4679_s9 + $0xc0] sm:$0xff]  ;;  %v2533_v5 = vld [vmem:[%s4681_s11 + $0x48] sm:$0xff] }
 0x39d   : > { %3088 = vmatprep.subr.mxu0 %v3398_v18 }
 0x39e   : > { %3089 = vmatpush3.msra.mxu0 %v2950_v7  ;;  %v2532_v7 = vld [vmem:[%s4681_s11 + $0x40] sm:$0xff] }
 0x39f   : > { %3090 = vmatprep.subr.mxu0 %v3398_v18 }
 0x3a0   : > { %3091 = vmatpush3.msra.mxu0 %v2949_v8  ;;  %v2531_v8 = vld [vmem:[%s4681_s11 + $0x38] sm:$0xff] }
 0x3a1   : > { %3092 = vmatprep.subr.mxu0 %v3398_v18 }
 0x3a2   : > { %3093 = vmatpush3.msra.mxu0 %v2948_v9  ;;  %v2530_v9 = vld [vmem:[%s4681_s11 + $0x30] sm:$0xff] }
 0x3a3   : > { %3094 = vmatprep.subr.mxu0 %v3398_v18 }
 0x3a9   : > { %v1762_v20 = vpop.f32.mrf.mxu1 }
 0x3aa   : > { %v1773_v26 = vadd.f32 %v1762_v20, %v1655_v21  ;;  %v2961_v20 = vld [vmem:[%s4679_s9 + $0xc8] sm:$0xff]  ;;  %v2959_v21 = vld [vmem:[%s4679_s9 + $0xb8] sm:$0xff] }
 0x3ab   : > { %v1764_v22 = vpop.f32.mrf.mxu1 }
 0x3ac   : > { %v1774_v23 = vadd.f32 %v1764_v22, %v1656_v17  ;;  %v1891_v39 = vadd.f32 %v1880_v10, %v1773_v26  ;;  %v2947_v17 = vld [vmem:[%s4679_s9 + $0x68] sm:$0xff]  ;;  %v2946_v22 = vld [vmem:[%s4679_s9 + $0x60] sm:$0xff]  ;;  %v2944_v26 = vld [vmem:[%s4679_s9 + $0x50] sm:$0xff] }
 0x3ad   : > { %v1768_v27 = vpop.f32.mrf.mxu1  ;;  %3095 = vmatpush3.msra.mxu0 %v2947_v17  ;;  %v2625_v17 = vld [vmem:[%s4683_s13 + $0x68] sm:$0xff] }
 0x3ae   : > { %v1775_v29 = vadd.f32 %v1768_v27, %v1657_v24  ;;  %v1892_v32 = vadd.f32 %v1882_v19, %v1774_v23  ;;  %v1907_v43 = vadd.f32 %v1900_v40, %v1891_v39  ;;  %v2962_v19 = vld [vmem:[%s4679_s9 + $0xd0] sm:$0xff]  ;;  %3096 = vmatprep.subr.mxu0 %v3398_v18  ;;  %v2945_v24 = vld [vmem:[%s4679_s9 + $0x58] sm:$0xff]  ;;  %v2956_v27 = vld [vmem:[%s4679_s9 + $0xa0] sm:$0xff] }
 0x3af   : > { %v1770_v31 = vpop.f32.mrf.mxu1  ;;  %v2958_v23 = vld [vmem:[%s4679_s9 + $0xb0] sm:$0xff]  ;;  %3097 = vmatpush3.msra.mxu0 %v2946_v22  ;;  %v2985_v39 = vld [vmem:[%s4679_s9 + $0x178] sm:$0xff] }
 0x3b0   : > { %v1893_v35 = vadd.f32 %v1886_v25, %v1775_v29  ;;  %v1776_v37 = vadd.f32 %v1770_v31, %v1658_v30  ;;  %v1908_v34 = vadd.f32 %v1904_v33, %v1892_v32  ;;  %v2957_v25 = vld [vmem:[%s4679_s9 + $0xa8] sm:$0xff]  ;;  %3098 = vmatprep.subr.mxu0 %v3398_v18  ;;  %v2623_v22 = vld [vmem:[%s4683_s13 + $0x58] sm:$0xff] }
 0x3b1   : > { %3099 = vmatpush3.msra.mxu0 %v2945_v24  ;;  %v2103_v30 = vld [vmem:[%s4679_s9 + $0x48] sm:$0xff] }
 0x3b2   : > { %v1894_v41 = vadd.f32 %v1888_v38, %v1776_v37  ;;  %v1909_v36 = vadd.f32 %v1900_v40, %v1893_v35  ;;  %3100 = vmatprep.subr.mxu0 %v3398_v18  ;;  %v2987_v31 = vld [vmem:[%s4679_s9 + $0x188] sm:$0xff]  ;;  %v2102_v35 = vld [vmem:[%s4679_s9 + $0x40] sm:$0xff]  ;;  %v2101_v38 = vld [vmem:[%s4679_s9 + $0x38] sm:$0xff] }
 0x3b3   : > { %3101 = vmatpush3.msra.mxu0 %v2944_v26  ;;  %v2986_v37 = vld [vmem:[%s4679_s9 + $0x180] sm:$0xff]  ;;  %v2100_v40 = vld [vmem:[%s4679_s9 + $0x30] sm:$0xff]  ;;  %v2621_v24 = vld [vmem:[%s4683_s13 + $0x48] sm:$0xff] }
 0x3b4   : > { %v1910_v42 = vadd.f32 %v1904_v33, %v1894_v41  ;;  %3105 = vmatprep.subr.mxu0 %v3398_v18  ;;  %v2984_v41 = vld [vmem:[%s4679_s9 + $0x170] sm:$0xff] }
 0x3b6   : > { %3324 = vtanh.f32 %v1910_v42  ;;  %v2098_v42 = vld [vmem:[%s4679_s9 + $0x20] sm:$0xff] }
 0x3b7   : > { %3326 = vtanh.f32 %v1909_v36  ;;  %v2099_v36 = vld [vmem:[%s4679_s9 + $0x28] sm:$0xff] }
 0x3b8   : > { %3328 = vtanh.f32 %v1908_v34  ;;  %v2983_v34 = vld [vmem:[%s4679_s9 + $0x168] sm:$0xff] }
 0x3b9   : > { %3330 = vtanh.f32 %v1907_v43  ;;  %v2982_v43 = vld [vmem:[%s4679_s9 + $0x160] sm:$0xff] }
 0x3c3   : > { %v3325_v44 = vpop.eup %3324 }
 0x3c4   : > { %v3327_v45 = vpop.eup %3326  ;;  %2940 = vmatprep.subr.msk.mxu1 %vm1920_vm6, %v3325_v44  ;;  %v2097_v44 = vld [vmem:[%s4679_s9 + $0x18] sm:$0xff] }
 0x3c5   : > { %v3329_v12 = vpop.eup %3328  ;;  %2941 = vmatpush1.msk.msra.mxu1 %vm1920_vm6, %v3327_v45  ;;  %v2981_v45 = vld [vmem:[%s4679_s9 + $0x158] sm:$0xff] }
 0x3c6   : > { %v3331_v6 = vpop.eup %3330  ;;  %1957 = vmatprep.subr.mxu1 %v3329_v12  ;;  %v2096_v12 = vld [vmem:[%s4679_s9 + $0x10] sm:$0xff] }
 0x3c7   : > { %1958 = vmatpush1.msra.mxu1 %v3331_v6  ;;  %v2095_v6 = vld [vmem:[%s4679_s9 + $0x8] sm:$0xff] }
 0x3c8   : > { %2942 = vmatmul.mubr.msk.f32.vlgmr.msra.gmra.mxu1 %vm1916_vm7, %v1915_v55  ;;  %2021 = vmatprep.subr.mxu1 %v3398_v18  ;;  %v2980_v55 = vld [vmem:[%s4679_s9 + $0x150] sm:$0xff] }
 0x3c9   : > { %2022 = vmatpush1.msra.mxu1 %v2013_v46  ;;  %v2979_v46 = vld [vmem:[%s4679_s9 + $0x148] sm:$0xff] }
 0x3ca   : > { %2023 = vmatprep.subr.mxu1 %v3398_v18 }
 0x3cb   : > { %2024 = vmatpush1.msra.mxu1 %v2012_v47  ;;  %v2094_v47 = vld [vmem:[%s4679_s9] sm:$0xff] }
 0x3cc   : > { %2025 = vmatprep.subr.mxu1 %v3398_v18 }
 0x3cd   : > { %2026 = vmatpush1.msra.mxu1 %v2011_v48  ;;  %v2978_v48 = vld [vmem:[%s4679_s9 + $0x140] sm:$0xff] }
 0x3ce   : > { %2027 = vmatprep.subr.mxu1 %v3398_v18 }
 0x3cf   : > { %2028 = vmatpush1.msra.mxu1 %v2010_v49  ;;  %v2976_v49 = vld [vmem:[%s4679_s9 + $0x138] sm:$0xff] }
 0x3d0   : > { %2029 = vmatprep.subr.mxu1 %v3398_v18 }
 0x3d1   : > { %2030 = vmatpush1.msra.mxu1 %v2009_v50 }
 0x3d2   : > { %2031 = vmatprep.subr.mxu1 %v3398_v18 }
 0x3d3   : > { %2032 = vmatpush1.msra.mxu1 %v2008_v51 }
 0x3d4   : > { %2033 = vmatprep.subr.mxu1 %v3398_v18 }
 0x3d5   : > { %2034 = vmatpush1.msra.mxu1 %v2007_v52  ;;  %v2975_v52 = vld [vmem:[%s4679_s9 + $0x130] sm:$0xff] }
 0x3d6   : > { %2035 = vmatprep.subr.mxu1 %v3398_v18 }
 0x3d7   : > { %2036 = vmatpush1.msra.mxu1 %v2006_v53  ;;  %v2974_v53 = vld [vmem:[%s4679_s9 + $0x128] sm:$0xff] }
 0x3d8   : > { %2037 = vmatprep.subr.mxu1 %v3398_v18 }
 0x3d9   : > { %2038 = vmatpush1.msra.mxu1 %v2005_v54  ;;  %v2973_v54 = vld [vmem:[%s4679_s9 + $0x120] sm:$0xff] }
 0x3da   : > { %2039 = vmatprep.subr.mxu1 %v3398_v18 }
 0x3db   : > { %2040 = vmatpush1.msra.mxu1 %v2004_v56  ;;  %v2972_v56 = vld [vmem:[%s4679_s9 + $0x118] sm:$0xff] }
 0x3dc   : > { %2041 = vmatprep.subr.mxu1 %v3398_v18 }
 0x3dd   : > { %2042 = vmatpush1.msra.mxu1 %v2003_v57  ;;  %v2971_v57 = vld [vmem:[%s4679_s9 + $0x110] sm:$0xff] }
 0x3de   : > { %2043 = vmatprep.subr.mxu1 %v3398_v18 }
 0x3df   : > { %2044 = vmatpush1.msra.mxu1 %v2002_v58  ;;  %v2970_v58 = vld [vmem:[%s4679_s9 + $0x108] sm:$0xff] }
 0x3e0   : > { %2045 = vmatprep.subr.mxu1 %v3398_v18 }
 0x3e1   : > { %2046 = vmatpush1.msra.mxu1 %v2001_v59  ;;  %v2969_v59 = vld [vmem:[%s4679_s9 + $0x100] sm:$0xff] }
 0x3e2   : > { %2047 = vmatprep.subr.mxu1 %v3398_v18 }
 0x3e3   : > { %2048 = vmatpush1.msra.mxu1 %v2000_v60  ;;  %v2968_v60 = vld [vmem:[%s4679_s9 + $0xf8] sm:$0xff] }
 0x3e4   : > { %2049 = vmatprep.subr.mxu1 %v3398_v18 }
 0x3e5   : > { %2050 = vmatpush1.msra.mxu1 %v1999_v61  ;;  %v2967_v61 = vld [vmem:[%s4679_s9 + $0xf0] sm:$0xff] }
 0x3e6   : > { %2051 = vmatprep.subr.mxu1 %v3398_v18 }
 0x3e7   : > { %2052 = vmatpush1.msra.mxu1 %v1998_v62 }
 0x3e8   : > { %2077 = vmatprep.subr.mxu1 %v3398_v18 }
 0x3e9   : > { %2078 = vmatpush2.msra.mxu1 %v2017_v63  ;;  %v2539_v63 = vld [vmem:[%s4681_s11 + $0x78] sm:$0xff] }
 0x3ea   : > { %2079 = vmatprep.subr.mxu1 %v3398_v18 }
 0x3eb   : > { %2080 = vmatpush2.msra.mxu1 %v2016_v0  ;;  %v2538_v0 = vld [vmem:[%s4681_s11 + $0x70] sm:$0xff] }
 0x3ec   : > { %2081 = vmatprep.subr.mxu1 %v3398_v18 }
 0x3ed   : > { %2082 = vmatpush2.msra.mxu1 %v2015_v1  ;;  %v2537_v1 = vld [vmem:[%s4681_s11 + $0x68] sm:$0xff] }
 0x3ee   : > { %2083 = vmatprep.subr.mxu1 %v3398_v18 }
 0x3ef   : > { %2084 = vmatpush2.msra.mxu1 %v2014_v2  ;;  %v2536_v2 = vld [vmem:[%s4681_s11 + $0x60] sm:$0xff] }
 0x3f0   : > { %3128 = vmatprep.subr.mxu1 %v3398_v18 }
 0x488   : > { %v1993_v10 = vpop.f32.mrf.mxu1 }
 0x48a   : > { %v1995_v11 = vpop.f32.mrf.mxu1 }
 0x48b   : > { %2943 = vmatprep.mubr.msk.f32.mxu1 %vm517_vm0, %v1995_v11  ;;  %v2528_v11 = vld [vmem:[%s4681_s11 + $0x20] sm:$0xff] }
 0x48c   : > { %2086 = vmatmul.mubr.f32.vlgmr.msra.gmra.mxu1 %v1993_v10  ;;  %v2529_v10 = vld [vmem:[%s4681_s11 + $0x28] sm:$0xff] }
 0x48d   : > { %3129 = vmatpush3.msra.mxu1 %v2965_v13  ;;  %3148 = vmatprep.mubr.msk.f32.mxu1 %vm3399_vm8, %v3398_v18  ;;  %v2527_v13 = vld [vmem:[%s4681_s11 + $0x18] sm:$0xff] }
 0x48e   : > { %3130 = vmatprep.subr.mxu1 %v3398_v18 }
 0x48f   : > { %3131 = vmatpush3.msra.mxu1 %v2964_v14  ;;  %v2526_v14 = vld [vmem:[%s4681_s11 + $0x10] sm:$0xff] }
 0x490   : > { %3132 = vmatprep.subr.mxu1 %v3398_v18 }
 0x491   : > { %3133 = vmatpush3.msra.mxu1 %v2963_v15  ;;  %v2525_v15 = vld [vmem:[%s4681_s11 + $0x8] sm:$0xff] }
 0x492   : > { %3134 = vmatprep.subr.mxu1 %v3398_v18 }
 0x493   : > { %3135 = vmatpush3.msra.mxu1 %v2962_v19  ;;  %v2524_v19 = vld [vmem:[%s4681_s11] sm:$0xff] }
 0x494   : > { %3136 = vmatprep.subr.mxu1 %v3398_v18 }
 0x495   : > { %3137 = vmatpush3.msra.mxu1 %v2961_v20  ;;  %v2627_v20 = vld [vmem:[%s4683_s13 + $0x78] sm:$0xff] }
 0x496   : > { %3138 = vmatprep.subr.mxu1 %v3398_v18 }
 0x497   : > { %3139 = vmatpush3.msra.mxu1 %v2960_v16  ;;  %v2626_v16 = vld [vmem:[%s4683_s13 + $0x70] sm:$0xff] }
 0x498   : > { %3140 = vmatprep.subr.mxu1 %v3398_v18 }
 0x499   : > { %3141 = vmatpush3.msra.mxu1 %v2959_v21  ;;  %v2624_v21 = vld [vmem:[%s4683_s13 + $0x60] sm:$0xff] }
 0x49a   : > { %3142 = vmatprep.subr.mxu1 %v3398_v18 }
 0x49b   : > { %3143 = vmatpush3.msra.mxu1 %v2958_v23  ;;  %v2622_v23 = vld [vmem:[%s4683_s13 + $0x50] sm:$0xff] }
 0x49c   : > { %3144 = vmatprep.subr.mxu1 %v3398_v18 }
 0x49d   : > { %3145 = vmatpush3.msra.mxu1 %v2957_v25 }
 0x49e   : > { %3146 = vmatprep.subr.mxu1 %v3398_v18 }
 0x49f   : > { %3147 = vmatpush3.msra.mxu1 %v2956_v27 }
 0x4a0   : > { %3174 = vmatprep.subr.mxu1 %v3398_v18 }
 0x54c   : > { %v2087_v28 = vpop.f32.mrf.mxu1 }
 0x54d   : > { %2092 = vst.msk [vmem:[#allocation3] sm:$0x1f] %vm2091_vm9, %v2087_v28 }
 0x54e   : > { %v2089_v29 = vpop.f32.mrf.mxu1 }
 0x554   : > { %v2104_v32 = vld [vmem:[#allocation3 + $0x1] sm:$0x1]  ;;  %v2263_v33 = vld [vmem:[#allocation3 + $0x2] sm:$0x1]  ;;  %v2093_v50 = vld [vmem:[#allocation3] sm:$0x1] }
 0x555   : > { %3103 = vmatmul.mubr.msk.f32.vlgmr.msra.gmra.mxu0 %vm2116_vm10, %v2104_v32  ;;  %3149 = vmatmul.mubr.msk.f32.vlgmr.msra.gmra.mxu1 %vm2116_vm10, %v2263_v33  ;;  %v2435_v51 = vld [vmem:[#allocation3 + $0x4] sm:$0x1]  ;;  %v2349_v62 = vld [vmem:[#allocation3 + $0x3] sm:$0x1] }
 0x556   : > { %3106 = vmatpush3.msra.mxu0 %v2103_v30  ;;  %3175 = vmatpush3.msra.mxu1 %v2987_v31 }
 0x557   : > { %3107 = vmatprep.subr.mxu0 %v3398_v18  ;;  %3176 = vmatprep.subr.mxu1 %v3398_v18 }
 0x558   : > { %3108 = vmatpush3.msra.mxu0 %v2102_v35  ;;  %3177 = vmatpush3.msra.mxu1 %v2986_v37 }
 0x559   : > { %3109 = vmatprep.subr.mxu0 %v3398_v18  ;;  %3178 = vmatprep.subr.mxu1 %v3398_v18 }
 0x55a   : > { %3110 = vmatpush3.msra.mxu0 %v2101_v38  ;;  %3179 = vmatpush3.msra.mxu1 %v2985_v39  ;;  %v2521_v39 = vld [vmem:[%s4680_s10] sm:$0x1] }
 0x55b   : > { %3111 = vmatprep.subr.mxu0 %v3398_v18  ;;  %3180 = vmatprep.subr.mxu1 %v3398_v18 }
 0x55c   : > { %3112 = vmatpush3.msra.mxu0 %v2100_v40  ;;  %3181 = vmatpush3.msra.mxu1 %v2984_v41 }
 0x55d   : > { %3113 = vmatprep.subr.mxu0 %v3398_v18  ;;  %3182 = vmatprep.subr.mxu1 %v3398_v18 }
 0x55e   : > { %3114 = vmatpush3.msra.mxu0 %v2099_v36  ;;  %3183 = vmatpush3.msra.mxu1 %v2983_v34 }
 0x55f   : > { %3115 = vmatprep.subr.mxu0 %v3398_v18  ;;  %3184 = vmatprep.subr.mxu1 %v3398_v18 }
 0x560   : > { %3116 = vmatpush3.msra.mxu0 %v2098_v42  ;;  %3185 = vmatpush3.msra.mxu1 %v2982_v43  ;;  %v2620_v42 = vld [vmem:[%s4683_s13 + $0x40] sm:$0xff]  ;;  %v2619_v43 = vld [vmem:[%s4683_s13 + $0x38] sm:$0xff] }
 0x561   : > { %3117 = vmatprep.subr.mxu0 %v3398_v18  ;;  %3186 = vmatprep.subr.mxu1 %v3398_v18 }
 0x562   : > { %3118 = vmatpush3.msra.mxu0 %v2097_v44  ;;  %3187 = vmatpush3.msra.mxu1 %v2981_v45  ;;  %v2618_v44 = vld [vmem:[%s4683_s13 + $0x30] sm:$0xff]  ;;  %v2617_v45 = vld [vmem:[%s4683_s13 + $0x28] sm:$0xff] }
 0x563   : > { %3119 = vmatprep.subr.mxu0 %v3398_v18  ;;  %3188 = vmatprep.subr.mxu1 %v3398_v18 }
 0x564   : > { %3120 = vmatpush3.msra.mxu0 %v2096_v12  ;;  %3189 = vmatpush3.msra.mxu1 %v2980_v55  ;;  %v2616_v12 = vld [vmem:[%s4683_s13 + $0x20] sm:$0xff]  ;;  %v2615_v55 = vld [vmem:[%s4683_s13 + $0x18] sm:$0xff] }
 0x565   : > { %3121 = vmatprep.subr.mxu0 %v3398_v18  ;;  %3190 = vmatprep.subr.mxu1 %v3398_v18 }
 0x566   : > { %3122 = vmatpush3.msra.mxu0 %v2095_v6  ;;  %3191 = vmatpush3.msra.mxu1 %v2979_v46  ;;  %v2614_v6 = vld [vmem:[%s4683_s13 + $0x10] sm:$0xff]  ;;  %v2613_v46 = vld [vmem:[%s4683_s13 + $0x8] sm:$0xff] }
 0x567   : > { %3123 = vmatprep.subr.mxu0 %v3398_v18  ;;  %3192 = vmatprep.subr.mxu1 %v3398_v18 }
 0x568   : > { %3124 = vmatpush3.msra.mxu0 %v2094_v47  ;;  %3125 = vmatprep.mubr.msk.f32.mxu0 %vm3399_vm8, %v3398_v18  ;;  %v2612_v47 = vld [vmem:[%s4683_s13] sm:$0xff] }
 0x569   : > { %3193 = vmatpush3.msra.mxu1 %v2978_v48  ;;  %3194 = vmatprep.mubr.msk.f32.mxu1 %vm3399_vm8, %v3398_v18  ;;  %v2540_v48 = vld [vmem:[%s4682_s12] sm:$0x1] }
 0x56a   : > { %3126 = vmatmul.mubr.msk.f32.vlgmr.msra.gmra.mxu0 %vm2116_vm10, %v2093_v50  ;;  %3151 = vmatprep.subr.mxu0 %v3398_v18 }
 0x56b   : > { %3195 = vmatmul.mubr.msk.f32.vlgmr.msra.gmra.mxu1 %vm2116_vm10, %v2435_v51  ;;  %3152 = vmatpush3.msra.mxu0 %v2976_v49 }
 0x56c   : > { %3153 = vmatprep.subr.mxu0 %v3398_v18  ;;  %3171 = vmatprep.mubr.msk.f32.mxu0 %vm3399_vm8, %v3398_v18 }
 0x56d   : > { %3154 = vmatpush3.msra.mxu0 %v2975_v52  ;;  %3232 = vmatprep.subr.mxu1 %v3398_v18 }
 0x56e   : > { %3155 = vmatprep.subr.mxu0 %v3398_v18  ;;  %3264 = vmatprep.mubr.msk.f32.mxu1 %vm3399_vm8, %v3398_v18 }
 0x56f   : > { %3156 = vmatpush3.msra.mxu0 %v2974_v53  ;;  %3233 = vmatpush3.msra.mxu1 %v2627_v20  ;;  %v2628_v53 = vld [vmem:[%s4684_s14] sm:$0x1] }
 0x570   : > { %3157 = vmatprep.subr.mxu0 %v3398_v18  ;;  %3234 = vmatprep.subr.mxu1 %v3398_v18 }
 0x571   : > { %3158 = vmatpush3.msra.mxu0 %v2973_v54  ;;  %3235 = vmatpush3.msra.mxu1 %v2626_v16 }
 0x572   : > { %3159 = vmatprep.subr.mxu0 %v3398_v18  ;;  %3236 = vmatprep.subr.mxu1 %v3398_v18 }
 0x573   : > { %3160 = vmatpush3.msra.mxu0 %v2972_v56  ;;  %3237 = vmatpush3.msra.mxu1 %v2625_v17 }
 0x574   : > { %3161 = vmatprep.subr.mxu0 %v3398_v18  ;;  %3238 = vmatprep.subr.mxu1 %v3398_v18 }
 0x575   : > { %3162 = vmatpush3.msra.mxu0 %v2971_v57  ;;  %3239 = vmatpush3.msra.mxu1 %v2624_v21 }
 0x576   : > { %3163 = vmatprep.subr.mxu0 %v3398_v18  ;;  %3240 = vmatprep.subr.mxu1 %v3398_v18 }
 0x577   : > { %3164 = vmatpush3.msra.mxu0 %v2970_v58  ;;  %3241 = vmatpush3.msra.mxu1 %v2623_v22 }
 0x578   : > { %3165 = vmatprep.subr.mxu0 %v3398_v18  ;;  %3242 = vmatprep.subr.mxu1 %v3398_v18 }
 0x579   : > { %3166 = vmatpush3.msra.mxu0 %v2969_v59  ;;  %3243 = vmatpush3.msra.mxu1 %v2622_v23 }
 0x57a   : > { %3167 = vmatprep.subr.mxu0 %v3398_v18  ;;  %3244 = vmatprep.subr.mxu1 %v3398_v18 }
 0x57b   : > { %3168 = vmatpush3.msra.mxu0 %v2968_v60  ;;  %3245 = vmatpush3.msra.mxu1 %v2621_v24 }
 0x57c   : > { %3169 = vmatprep.subr.mxu0 %v3398_v18  ;;  %3246 = vmatprep.subr.mxu1 %v3398_v18 }
 0x57d   : > { %3170 = vmatpush3.msra.mxu0 %v2967_v61  ;;  %3247 = vmatpush3.msra.mxu1 %v2620_v42 }
 0x57e   : > { %3172 = vmatmul.mubr.msk.f32.vlgmr.msra.gmra.mxu0 %vm2116_vm10, %v2349_v62  ;;  %3197 = vmatprep.subr.mxu0 %v3398_v18 }
 0x57f   : > { %3229 = vmatprep.mubr.msk.f32.mxu0 %vm3399_vm8, %v3398_v18  ;;  %3198 = vmatpush3.msra.mxu0 %v2539_v63 }
 0x580   : > { %3199 = vmatprep.subr.mxu0 %v3398_v18  ;;  %3248 = vmatprep.subr.mxu1 %v3398_v18 }
 0x581   : > { %3200 = vmatpush3.msra.mxu0 %v2538_v0  ;;  %3249 = vmatpush3.msra.mxu1 %v2619_v43 }
 0x582   : > { %3201 = vmatprep.subr.mxu0 %v3398_v18  ;;  %3250 = vmatprep.subr.mxu1 %v3398_v18 }
 0x583   : > { %3202 = vmatpush3.msra.mxu0 %v2537_v1  ;;  %3251 = vmatpush3.msra.mxu1 %v2618_v44 }
 0x584   : > { %3203 = vmatprep.subr.mxu0 %v3398_v18  ;;  %3252 = vmatprep.subr.mxu1 %v3398_v18 }
 0x585   : > { %3204 = vmatpush3.msra.mxu0 %v2536_v2  ;;  %3253 = vmatpush3.msra.mxu1 %v2617_v45 }
 0x586   : > { %3205 = vmatprep.subr.mxu0 %v3398_v18  ;;  %3254 = vmatprep.subr.mxu1 %v3398_v18 }
 0x587   : > { %3206 = vmatpush3.msra.mxu0 %v2535_v3  ;;  %3255 = vmatpush3.msra.mxu1 %v2616_v12 }
 0x588   : > { %3207 = vmatprep.subr.mxu0 %v3398_v18  ;;  %3256 = vmatprep.subr.mxu1 %v3398_v18 }
 0x589   : > { %3208 = vmatpush3.msra.mxu0 %v2534_v4  ;;  %3257 = vmatpush3.msra.mxu1 %v2615_v55 }
 0x58a   : > { %3209 = vmatprep.subr.mxu0 %v3398_v18  ;;  %3258 = vmatprep.subr.mxu1 %v3398_v18 }
 0x58b   : > { %3210 = vmatpush3.msra.mxu0 %v2533_v5  ;;  %3259 = vmatpush3.msra.mxu1 %v2614_v6 }
 0x58c   : > { %3211 = vmatprep.subr.mxu0 %v3398_v18  ;;  %3260 = vmatprep.subr.mxu1 %v3398_v18 }
 0x58d   : > { %3212 = vmatpush3.msra.mxu0 %v2532_v7  ;;  %3261 = vmatpush3.msra.mxu1 %v2613_v46 }
 0x58e   : > { %3213 = vmatprep.subr.mxu0 %v3398_v18  ;;  %3262 = vmatprep.subr.mxu1 %v3398_v18 }
 0x58f   : > { %3214 = vmatpush3.msra.mxu0 %v2531_v8  ;;  %3263 = vmatpush3.msra.mxu1 %v2612_v47 }
 0x590   : > { %3215 = vmatprep.subr.mxu0 %v3398_v18 }
 0x591   : > { %3216 = vmatpush3.msra.mxu0 %v2530_v9 }
 0x592   : > { %3217 = vmatprep.subr.mxu0 %v3398_v18 }
 0x593   : > { %3218 = vmatpush3.msra.mxu0 %v2529_v10 }
 0x594   : > { %3219 = vmatprep.subr.mxu0 %v3398_v18 }
 0x595   : > { %3220 = vmatpush3.msra.mxu0 %v2528_v11 }
 0x596   : > { %3221 = vmatprep.subr.mxu0 %v3398_v18 }
 0x597   : > { %3222 = vmatpush3.msra.mxu0 %v2527_v13 }
 0x598   : > { %3223 = vmatprep.subr.mxu0 %v3398_v18 }
 0x599   : > { %3224 = vmatpush3.msra.mxu0 %v2526_v14 }
 0x59a   : > { %3225 = vmatprep.subr.mxu0 %v3398_v18 }
 0x59b   : > { %3226 = vmatpush3.msra.mxu0 %v2525_v15 }
 0x59c   : > { %3227 = vmatprep.subr.mxu0 %v3398_v18 }
 0x59d   : > { %3228 = vmatpush3.msra.mxu0 %v2524_v19 }
 0x615   : > { %v2186_v25 = vpop.f32.mrf.mxu0  ;;  %v2344_v26 = vpop.f32.mrf.mxu1 }
 0x617   : > { %v3104_v27 = vpop.f32.mrf.mxu0  ;;  %v3150_v28 = vpop.f32.mrf.mxu1 }
 0x62a   : > { %v2259_v29 = vpop.f32.mrf.mxu0 }
 0x62b   : > { %v2516_v30 = vpop.f32.mrf.mxu1  ;;  %v2260_v33 = vadd.f32 %v2259_v29, %v2186_v25 }
 0x62c   : > { %v3127_v31 = vpop.f32.mrf.mxu0 }
 0x62d   : > { %v3196_v32 = vpop.f32.mrf.mxu1  ;;  %v2348_v35 = vadd.f32 %v2344_v26, %v2260_v33 }
 0x63e   : > { %v2430_v37 = vpop.f32.mrf.mxu0 }
 0x63f   : > { %v2434_v38 = vadd.f32 %v2430_v37, %v2348_v35 }
 0x640   : > { %v3173_v40 = vpop.f32.mrf.mxu0 }
 0x641   : > { %v2520_v41 = vadd.f32 %v2516_v30, %v2434_v38 }
 0x643   : > { %v2522_v36 = vadd.f32 %v2521_v39, %v2520_v41 }
 0x645   : > { %3332 = vtanh.f32 %v2522_v36 }
 0x652   : > { %v3333_v34 = vpop.eup %3332 }
 0x653   : > { %3230 = vmatmul.mubr.f32.vlgmr.msra.gmra.mxu0 %v3333_v34 }
 0x713   : > { %v2607_v49 = vpop.f32.mrf.mxu0 }
 0x714   : > { %v2608_v50 = vadd.f32 %v2607_v49, %v2540_v48 }
 0x715   : > { %v3231_v51 = vpop.f32.mrf.mxu0 }
 0x716   : > { %3334 = vtanh.f32 %v2608_v50 }
 0x723   : > { %v3335_v52 = vpop.eup %3334 }
 0x724   : > { %3265 = vmatmul.mubr.f32.vlgmr.msra.gmra.mxu1 %v3335_v52 }
 0x7e4   : > { %v2695_v18 = vpop.f32.mrf.mxu1 }
 0x7e5   : > { %v2696_v54 = vadd.f32 %v2695_v18, %v2628_v53 }
 0x7e6   : > { %v3266_v56 = vpop.f32.mrf.mxu1 }
 0x7e7   : > { %2699 = vst [vmem:[%s486_s25] sm:$0x1] %v2696_v54 }
 0x7e8   : > { %3349 = shalt.err (!%p3346_p3)
}
 0x7e9   : > { %s3350_s17 = scalar_lea.hbm %s4635_s27, 16  ;;  %s3354_s24 = scalar_lea.hbm %s4685_s15, 32 }
 0x7ea   : > { %p3351_p4 = scmp.ne.s32.totalorder %s4635_s27, %s3350_s17  ;;  %p3355_p9 = scmp.lt.s32.totalorder %s4635_s27, %s4685_s15 }
 0x7eb   : > { %p3356_p10 = scmp.lt.s32.totalorder %s3354_s24, %s3350_s17 }
 0x7ec   : > { %p3352_p7 = pnand %p3351_p4, %p3519_p5 }
 0x7ed   : > { %p3357_p11 = por %p3356_p10, %p3355_p9 }
 0x7ee   : > { %p3353_p8 = pneg %p3352_p7 }
 0x7f0   : > { %p3358_p12 = pnand %p3357_p11, %p3353_p8 }
 0x7f2   : > { %3361 = shalt.err (!%p3358_p12)
}
 0x7f3   : > { %3267 = dma.vmem_to_hbm [thread:$0]  (%p3519_p5), %s2714_s26, 16, %s4635_s27, %s2701_s30  }
 0x7f4 PF: > { %s4698_s23 = sld [smem:[#allocation7_spill]]  ;;  %p3273_p13 = scmp.ge.s32.totalorder %s3396_s21, 2 }
 0x7f6   : > { %p3270_p0 = pnand %p3273_p13, %p3523_p6 }
 0x7f8   : > { %p3271_p1 = pneg %p3270_p0 }
 0x7fa   : > { %s2725_s16 = sand.u32 1, %s4698_s23  }
 0x7fb   : > { %s2726_s29 = scalar_lea.sflag [#allocation5], %s2725_s16 }
 0x7fc   : > { %3379 = dma.done.wait (%p3271_p1), %s2726_s29, 16  }
 0x7fd   : > { %3381 = vsyncadd (%p3271_p1), %s2726_s29, 4294967280  ;;  %s4700_s21 = sld [smem:[#allocation9_spill]]  ;;  %s4703_s18 = smov %s3388_s19 }
 0x7fe   : > { %s4701_s17 = sld [smem:[#allocation8_spill]] }
 0x7ff   : > { %s4702_s20 = sld [smem:[#allocation10_spill]] }
 0x803   : > { %p25_p2 = scmp.ge.s32.totalorder %s4700_s21, 4  }
 0x804   : > { %s4704_s19 = smov %s4701_s17 }
 0x805   :  { %27 = sbr.rel (!%p25_p2) target bundleno = 3 (0x3), region = 127 }
 0x80a   :  { %2730 = vsyncpa [#allocation5], 1 }
 0x80b   :  { %2732 = vsyncpa [#allocation5 + $0x1], 1 }

</bundles_post_ra>
